<compile_context>
chip_gen: v7x
topology: tpu7x:2x2x1
jax: 0.10.0
libtpu: 0.0.40
codegen_flags: <defaults>
</compile_context>

<pallas_src>
import functools

import jax
import jax.numpy as jnp
from jax.experimental import pallas as pl
from jax.experimental.pallas import tpu as pltpu


def _layernorm(x, w, b, eps=1e-5):
    # The LayerNorm subclass upcasts to fp32, normalizes, then casts back.
    x32 = x.astype(jnp.float32)
    mu = jnp.mean(x32, axis=-1, keepdims=True)
    var = jnp.mean(jnp.square(x32 - mu), axis=-1, keepdims=True)
    y = (x32 - mu) * jax.lax.rsqrt(var + eps) * w.astype(jnp.float32) + b.astype(jnp.float32)
    return y.astype(x.dtype)


def _vit_kernel(n_head,
                x_ref, mask_ref,
                ln_pre_w, ln_pre_b, ln_post_w, ln_post_b,
                ln1_w, ln1_b, wq, bq, wk, bk, wv, bv, wo, bo,
                ln2_w, ln2_b, wfc, bfc, wproj, bproj,
                out_ref):
    layer = pl.program_id(1)
    n_layers = pl.num_programs(1)

    # Layer 0 of each batch tile: out_ref <- ln_pre(x). out_ref keeps the same
    # block index across the layer axis and carries the residual stream.
    @pl.when(layer == 0)
    def _():
        out_ref[...] = _layernorm(x_ref[...], ln_pre_w[...], ln_pre_b[...])

    Bt, L, D = out_ref.shape
    H = n_head
    Dh = D // H
    G = H * Bt                    # merged (head, sequence) batch for attention
    T = Bt * L                    # tokens in this batch tile
    f32 = jnp.float32
    cdt = jnp.bfloat16            # MXU operand dtype

    x = out_ref[...]              # [Bt, L, D] residual, input dtype
    xt = x.reshape(T, D)          # flattened token matrix

    # key_padding_mask semantics: mask > 0.5 => ignore this key. f32 additive bias.
    neg = jnp.where(mask_ref[...] > 0.5, -1e30, 0.0).astype(f32)      # [Bt, 1, L]

    # ---------------- multi-head self attention (q = k = v = ln_1(x)) ----------------
    h1 = _layernorm(xt, ln1_w[...], ln1_b[...]).astype(cdt)           # [T, D] bf16

    # Per-head projections with [D, Dh] (K, N)-oriented weights: head-major
    # Q/K/V without any lane slicing; stack only adds a new leading axis.
    # 1/sqrt(Dh) is already folded into wq / bq host-side; cast to bf16 once.
    qs, ks, vs = [], [], []
    for h in range(H):
        qs.append((jnp.dot(h1, wq[h], preferred_element_type=f32) + bq[h]).astype(cdt))
        ks.append((jnp.dot(h1, wk[h], preferred_element_type=f32) + bk[h]).astype(cdt))
        vs.append((jnp.dot(h1, wv[h], preferred_element_type=f32) + bv[h]).astype(cdt))
    # [H, T, Dh] -> [G = H*Bt, L, Dh] (leading-dim reshapes only; g = h*Bt + b)
    qg = jnp.stack(qs, axis=0).reshape(G, L, Dh)
    kg = jnp.stack(ks, axis=0).reshape(G, L, Dh)
    vg = jnp.stack(vs, axis=0).reshape(G, L, Dh)

    # Batched-head attention in the proven 'gqd,gkd->gqk' / 'gqk,gkd->gqd' forms.
    s = jnp.einsum('gqd,gkd->gqk', qg, kg, preferred_element_type=f32)   # [G, L, L] f32
    s = s.reshape(H, Bt, L, L) + neg[None]                               # key-padding mask
    m = jnp.max(s, axis=-1, keepdims=True)
    p = jnp.exp(s - m)
    denom = jnp.sum(p, axis=-1, keepdims=True)
    p = (p * pl.reciprocal(denom, approx=True)).astype(cdt)              # EUP, not VALU div
    p = p.reshape(G, L, L)

    o = jnp.einsum('gqk,gkd->gqd', p, vg, preferred_element_type=f32)    # [G, L, Dh] f32
    o = o.astype(cdt).reshape(H, T, Dh)                                  # head-major, bf16

    # Output projection: accumulate per-head [T, Dh] @ [Dh, D] directly into one
    # [T, D] f32 running sum -> no [H, T, D] f32 intermediate, no lane concat.
    acc = jnp.zeros((T, D), f32)
    for h in range(H):
        acc = acc + jnp.dot(o[h], wo[h], preferred_element_type=f32)
    attn = acc + bo[...]                                                 # [T, D] f32
    xt = xt + attn.astype(xt.dtype)

    # ---------------- MLP: c_fc -> QuickGELU -> c_proj ----------------
    h2 = _layernorm(xt, ln2_w[...], ln2_b[...]).astype(cdt)             # [T, D] bf16
    u = jnp.dot(h2, wfc[...], preferred_element_type=f32) + bfc[...]    # [T, 4D] f32
    u = (u * jax.nn.sigmoid(1.702 * u)).astype(cdt)                     # QuickGELU
    mlp = jnp.dot(u, wproj[...], preferred_element_type=f32) + bproj[...]  # [T, D] f32
    xt = xt + mlp.astype(xt.dtype)

    x_new = xt.reshape(Bt, L, D)
    out_ref[...] = x_new

    # Final layer of this batch tile: apply ln_post.
    @pl.when(layer == n_layers - 1)
    def _():
        out_ref[...] = _layernorm(x_new, ln_post_w[...], ln_post_b[...])


def _vmem_limit_bytes():
    # ~75% of per-TC physical VMEM, capped at 96 MiB:
    #   v5e/v6e (128 MiB) -> 96 MiB, v7x (64 MiB) -> 48 MiB.
    cap = None
    try:
        cap = getattr(pltpu.get_tpu_info(), "vmem_capacity_bytes", None)
    except Exception:
        cap = None
    if not cap:
        cap = 64 * 1024 * 1024
    return int(min((cap * 3) // 4, 96 * 1024 * 1024))


def visual_transformer_forward(x, x_mask, params, n_head, block_batch=2):
    B, L, D = x.shape
    NL = params['wq'].shape[0]          # = layers - 1 transformer blocks (as in the module)
    assert D % n_head == 0

    # Pick a batch-block size that divides B (Bt >= 2 amortizes per-layer weight DMA).
    bt = max(1, min(block_batch, B))
    while B % bt:
        bt -= 1
    n_tiles = B // bt

    # [B, L] -> [B, 1, L] so the mask BlockSpec's last two dims equal the full dims.
    mask3 = x_mask.reshape(B, 1, L).astype(jnp.float32)

    def bcast_spec(shape):              # broadcast across the whole grid
        nd = len(shape)
        return pl.BlockSpec(shape, lambda b, l, _nd=nd: (0,) * _nd)

    def layer_spec(shape):              # leading axis indexes the layer (squeezed in-kernel)
        nd = len(shape)
        return pl.BlockSpec((None,) + tuple(shape[1:]),
                            lambda b, l, _nd=nd: (l,) + (0,) * (_nd - 1))

    layer_keys = ('ln1_w', 'ln1_b', 'wq', 'bq', 'wk', 'bk', 'wv', 'bv', 'wo', 'bo',
                  'ln2_w', 'ln2_b', 'wfc', 'bfc', 'wproj', 'bproj')

    in_specs = [
        # x: block index depends only on the batch tile -> DMA'd once per batch tile.
        pl.BlockSpec((bt, L, D), lambda b, l: (b, 0, 0)),
        pl.BlockSpec((bt, 1, L), lambda b, l: (b, 0, 0)),
        bcast_spec(params['ln_pre_w'].shape),
        bcast_spec(params['ln_pre_b'].shape),
        bcast_spec(params['ln_post_w'].shape),
        bcast_spec(params['ln_post_b'].shape),
    ] + [layer_spec(params[k].shape) for k in layer_keys]

    args = [x, mask3,
            params['ln_pre_w'], params['ln_pre_b'],
            params['ln_post_w'], params['ln_post_b']] + \
           [params[k] for k in layer_keys]

    # Residual stream resident per batch tile across the layer axis.
    out_spec = pl.BlockSpec((bt, L, D), lambda b, l: (b, 0, 0))

    return pl.pallas_call(
        functools.partial(_vit_kernel, n_head),
        out_shape=jax.ShapeDtypeStruct((B, L, D), x.dtype),
        grid_spec=pltpu.PrefetchScalarGridSpec(
            num_scalar_prefetch=0,
            grid=(n_tiles, NL),
            in_specs=in_specs,
            out_specs=out_spec,
        ),
        compiler_params=pltpu.CompilerParams(
            dimension_semantics=("parallel", "arbitrary"),
            vmem_limit_bytes=_vmem_limit_bytes()),
    )(*args)


def init_params(key, D, NL, H):
    """Create torch-layout random params and convert to the kernel layouts."""
    Dh = D // H
    f32, bf16 = jnp.float32, jnp.bfloat16
    std = 0.02
    scale = Dh ** -0.5
    ks = jax.random.split(key, 8)

    # torch layouts: in_proj_weight [3D, D], out_proj.weight [D, D],
    # c_fc.weight [4D, D], c_proj.weight [D, 4D]; y = x @ W.T + b.
    w_in = std * jax.random.normal(ks[0], (NL, 3 * D, D), f32)
    b_in = std * jax.random.normal(ks[1], (NL, 3 * D), f32)
    w_out = std * jax.random.normal(ks[2], (NL, D, D), f32)
    b_out = std * jax.random.normal(ks[3], (NL, D), f32)
    w_fc = std * jax.random.normal(ks[4], (NL, 4 * D, D), f32)
    b_fc = std * jax.random.normal(ks[5], (NL, 4 * D), f32)
    w_pr = std * jax.random.normal(ks[6], (NL, D, 4 * D), f32)
    b_pr = std * jax.random.normal(ks[7], (NL, D), f32)

    def split_heads_kn(w, do_scale):
        # [NL, H*Dh, D] (out, in) -> [NL, H, D, Dh] ((K, N) per head); host-side, free.
        w4 = jnp.transpose(w.reshape(NL, H, Dh, D), (0, 1, 3, 2))
        if do_scale:
            w4 = w4 * scale
        return w4.astype(bf16)

    wq_t, wk_t, wv_t = w_in[:, :D], w_in[:, D:2 * D], w_in[:, 2 * D:]
    bq_t, bk_t, bv_t = b_in[:, :D], b_in[:, D:2 * D], b_in[:, 2 * D:]

    p = {
        'ln_pre_w': jnp.ones((1, D), f32),   'ln_pre_b': jnp.zeros((1, D), f32),
        'ln_post_w': jnp.ones((1, D), f32),  'ln_post_b': jnp.zeros((1, D), f32),
        'ln1_w': jnp.ones((NL, 1, D), f32),  'ln1_b': jnp.zeros((NL, 1, D), f32),
        'ln2_w': jnp.ones((NL, 1, D), f32),  'ln2_b': jnp.zeros((NL, 1, D), f32),
        # matmul weights in bf16, (K, N) orientation, per-head for Q/K/V/O;
        # 1/sqrt(Dh) folded into the Q weights and bias.
        'wq': split_heads_kn(wq_t, True),                       # [NL, H, D, Dh]
        'wk': split_heads_kn(wk_t, False),
        'wv': split_heads_kn(wv_t, False),
        'bq': bq_t.reshape(NL, H, 1, Dh) * scale,                # f32
        'bk': bk_t.reshape(NL, H, 1, Dh),
        'bv': bv_t.reshape(NL, H, 1, Dh),
        # out_proj.weight [D, D] -> [NL, H, Dh, D] so o_h @ wo[h] == concat @ W_o.T
        'wo': jnp.transpose(w_out.reshape(NL, D, H, Dh), (0, 2, 3, 1)).astype(bf16),
        'bo': b_out.reshape(NL, 1, D),
        'wfc': jnp.transpose(w_fc, (0, 2, 1)).astype(bf16),      # [NL, D, 4D]
        'bfc': b_fc.reshape(NL, 1, 4 * D),
        'wproj': jnp.transpose(w_pr, (0, 2, 1)).astype(bf16),    # [NL, 4D, D]
        'bproj': b_pr.reshape(NL, 1, D),
    }
    return p


if __name__ == "__main__":
    # Small VisualTransformer config: width=32, heads=4, layers=3 -> 2 blocks.
    B, L, D, HEADS, LAYERS = 4, 8, 32, 4, 3
    NL = LAYERS - 1   # the module builds (layers - 1) ResidualAttentionBlocks

    key = jax.random.PRNGKey(0)
    kx, kp = jax.random.split(key)
    x = jax.random.normal(kx, (B, L, D), jnp.float32)         # [B, L, D] embedded tokens
    # key_padding_mask: 1.0 = padded key to ignore (last token of each sample).
    x_mask = jnp.zeros((B, L), jnp.float32).at[:, L - 1].set(1.0)

    params = init_params(kp, D, NL, HEADS)

    out = visual_transformer_forward(x, x_mask, params, HEADS, block_batch=2)
    jax.block_until_ready(out)
    assert out.shape == (B, L, D) and out.dtype == x.dtype
    print("KERNEL_OK")
</pallas_src>

<mosaic_0001>
module attributes {stable_mosaic.version = 11 : i64} {
  func.func @_vit_kernel(%arg0: i32, %arg1: i32, %arg2: memref<2x8x32xf32, #tpu.memory_space<vmem>>, %arg3: memref<2x1x8xf32, #tpu.memory_space<vmem>>, %arg4: memref<1x32xf32, #tpu.memory_space<vmem>>, %arg5: memref<1x32xf32, #tpu.memory_space<vmem>>, %arg6: memref<1x32xf32, #tpu.memory_space<vmem>>, %arg7: memref<1x32xf32, #tpu.memory_space<vmem>>, %arg8: memref<1x1x32xf32, #tpu.memory_space<vmem>>, %arg9: memref<1x1x32xf32, #tpu.memory_space<vmem>>, %arg10: memref<1x4x32x8xbf16, #tpu.memory_space<vmem>>, %arg11: memref<1x4x1x8xf32, #tpu.memory_space<vmem>>, %arg12: memref<1x4x32x8xbf16, #tpu.memory_space<vmem>>, %arg13: memref<1x4x1x8xf32, #tpu.memory_space<vmem>>, %arg14: memref<1x4x32x8xbf16, #tpu.memory_space<vmem>>, %arg15: memref<1x4x1x8xf32, #tpu.memory_space<vmem>>, %arg16: memref<1x4x8x32xbf16, #tpu.memory_space<vmem>>, %arg17: memref<1x1x32xf32, #tpu.memory_space<vmem>>, %arg18: memref<1x1x32xf32, #tpu.memory_space<vmem>>, %arg19: memref<1x1x32xf32, #tpu.memory_space<vmem>>, %arg20: memref<1x32x128xbf16, #tpu.memory_space<vmem>>, %arg21: memref<1x1x128xf32, #tpu.memory_space<vmem>>, %arg22: memref<1x128x32xbf16, #tpu.memory_space<vmem>>, %arg23: memref<1x1x32xf32, #tpu.memory_space<vmem>>, %arg24: memref<2x8x32xf32, #tpu.memory_space<vmem>>) attributes {dimension_semantics = [#tpu.dimension_semantics<parallel>, #tpu.dimension_semantics<arbitrary>], iteration_bounds = array<i64: 2, 2>, scalar_prefetch = 0 : i64, scratch_operands = 0 : i64, tpu.core_type = #tpu.core_type<tc>, window_params = [{transform_indices = @transform_0, window_bounds = array<i64: 2, 8, 32>}, {transform_indices = @transform_1, window_bounds = array<i64: 2, 1, 8>}, {pipeline_mode = #tpu.pipeline_mode<synchronous>, transform_indices = @transform_2, window_bounds = array<i64: 1, 32>}, {pipeline_mode = #tpu.pipeline_mode<synchronous>, transform_indices = @transform_3, window_bounds = array<i64: 1, 32>}, {pipeline_mode = #tpu.pipeline_mode<synchronous>, transform_indices = @transform_4, window_bounds = array<i64: 1, 32>}, {pipeline_mode = #tpu.pipeline_mode<synchronous>, transform_indices = @transform_5, window_bounds = array<i64: 1, 32>}, {transform_indices = @transform_6, window_bounds = array<i64: 1, 1, 32>}, {transform_indices = @transform_7, window_bounds = array<i64: 1, 1, 32>}, {transform_indices = @transform_8, window_bounds = array<i64: 1, 4, 32, 8>}, {transform_indices = @transform_9, window_bounds = array<i64: 1, 4, 1, 8>}, {transform_indices = @transform_10, window_bounds = array<i64: 1, 4, 32, 8>}, {transform_indices = @transform_11, window_bounds = array<i64: 1, 4, 1, 8>}, {transform_indices = @transform_12, window_bounds = array<i64: 1, 4, 32, 8>}, {transform_indices = @transform_13, window_bounds = array<i64: 1, 4, 1, 8>}, {transform_indices = @transform_14, window_bounds = array<i64: 1, 4, 8, 32>}, {transform_indices = @transform_15, window_bounds = array<i64: 1, 1, 32>}, {transform_indices = @transform_16, window_bounds = array<i64: 1, 1, 32>}, {transform_indices = @transform_17, window_bounds = array<i64: 1, 1, 32>}, {transform_indices = @transform_18, window_bounds = array<i64: 1, 32, 128>}, {transform_indices = @transform_19, window_bounds = array<i64: 1, 1, 128>}, {transform_indices = @transform_20, window_bounds = array<i64: 1, 128, 32>}, {transform_indices = @transform_21, window_bounds = array<i64: 1, 1, 32>}, {transform_indices = @transform_22, window_bounds = array<i64: 2, 8, 32>}]} {
    %c0_i32 = arith.constant 0 : i32
    %0 = arith.cmpi eq, %arg1, %c0_i32 : i32
    %1 = arith.extui %0 : i1 to i32
    %c0_i32_0 = arith.constant 0 : i32
    %2 = arith.cmpi ne, %1, %c0_i32_0 : i32
    scf.if %2 {
      %c0_183 = arith.constant 0 : index
      %c0_184 = arith.constant 0 : index
      %c0_185 = arith.constant 0 : index
      %258 = vector.load %arg2[%c0_183, %c0_184, %c0_185] : memref<2x8x32xf32, #tpu.memory_space<vmem>>, vector<2x8x32xf32>
      %c0_186 = arith.constant 0 : index
      %c0_187 = arith.constant 0 : index
      %259 = vector.load %arg4[%c0_186, %c0_187] : memref<1x32xf32, #tpu.memory_space<vmem>>, vector<1x32xf32>
      %c0_188 = arith.constant 0 : index
      %c0_189 = arith.constant 0 : index
      %260 = vector.load %arg5[%c0_188, %c0_189] : memref<1x32xf32, #tpu.memory_space<vmem>>, vector<1x32xf32>
      %cst_190 = arith.constant dense<0.000000e+00> : vector<2x8xf32>
      %261 = vector.multi_reduction <add>, %258, %cst_190 [2] : vector<2x8x32xf32> to vector<2x8xf32>
      %262 = vector.shape_cast %261 : vector<2x8xf32> to vector<2x8x1xf32>
      %cst_191 = arith.constant 3.200000e+01 : f32
      %263 = vector.broadcast %cst_191 : f32 to vector<2x8x1xf32>
      %264 = arith.divf %262, %263 : vector<2x8x1xf32>
      %265 = vector.broadcast %264 : vector<2x8x1xf32> to vector<2x8x32xf32>
      %266 = arith.subf %258, %265 : vector<2x8x32xf32>
      %267 = arith.mulf %266, %266 : vector<2x8x32xf32>
      %cst_192 = arith.constant dense<0.000000e+00> : vector<2x8xf32>
      %268 = vector.multi_reduction <add>, %267, %cst_192 [2] : vector<2x8x32xf32> to vector<2x8xf32>
      %269 = vector.shape_cast %268 : vector<2x8xf32> to vector<2x8x1xf32>
      %cst_193 = arith.constant 3.200000e+01 : f32
      %270 = vector.broadcast %cst_193 : f32 to vector<2x8x1xf32>
      %271 = arith.divf %269, %270 : vector<2x8x1xf32>
      %272 = vector.broadcast %264 : vector<2x8x1xf32> to vector<2x8x32xf32>
      %273 = arith.subf %258, %272 : vector<2x8x32xf32>
      %cst_194 = arith.constant 9.99999974E-6 : f32
      %274 = vector.broadcast %cst_194 : f32 to vector<2x8x1xf32>
      %275 = arith.addf %271, %274 : vector<2x8x1xf32>
      %276 = math.rsqrt %275 : vector<2x8x1xf32>
      %277 = vector.broadcast %276 : vector<2x8x1xf32> to vector<2x8x32xf32>
      %278 = arith.mulf %273, %277 : vector<2x8x32xf32>
      %279 = vector.shape_cast %259 : vector<1x32xf32> to vector<1x1x32xf32>
      %280 = vector.broadcast %279 : vector<1x1x32xf32> to vector<2x8x32xf32>
      %281 = arith.mulf %278, %280 : vector<2x8x32xf32>
      %282 = vector.shape_cast %260 : vector<1x32xf32> to vector<1x1x32xf32>
      %283 = vector.broadcast %282 : vector<1x1x32xf32> to vector<2x8x32xf32>
      %284 = arith.addf %281, %283 : vector<2x8x32xf32>
      %c0_195 = arith.constant 0 : index
      %c0_196 = arith.constant 0 : index
      %c0_197 = arith.constant 0 : index
      %285 = vector.load %arg24[%c0_195, %c0_196, %c0_197] : memref<2x8x32xf32, #tpu.memory_space<vmem>>, vector<2x8x32xf32>
      tpu.vector_store %arg24[%c0_195, %c0_196, %c0_197], %284 {strides = array<i32>} : memref<2x8x32xf32, #tpu.memory_space<vmem>>, vector<2x8x32xf32>,
    } else {
    }
    %c0 = arith.constant 0 : index
    %c0_1 = arith.constant 0 : index
    %c0_2 = arith.constant 0 : index
    %3 = vector.load %arg24[%c0, %c0_1, %c0_2] : memref<2x8x32xf32, #tpu.memory_space<vmem>>, vector<2x8x32xf32>
    %4 = vector.shape_cast %3 : vector<2x8x32xf32> to vector<16x32xf32>
    %c0_3 = arith.constant 0 : index
    %c0_4 = arith.constant 0 : index
    %c0_5 = arith.constant 0 : index
    %5 = vector.load %arg3[%c0_3, %c0_4, %c0_5] : memref<2x1x8xf32, #tpu.memory_space<vmem>>, vector<2x1x8xf32>
    %cst = arith.constant 5.000000e-01 : f32
    %6 = vector.broadcast %cst : f32 to vector<2x1x8xf32>
    %7 = arith.cmpf ogt, %5, %6 : vector<2x1x8xf32>
    %cst_6 = arith.constant -1.000000e+30 : f32
    %cst_7 = arith.constant 0.000000e+00 : f32
    %8 = vector.broadcast %cst_6 : f32 to vector<2x1x8xf32>
    %9 = vector.broadcast %cst_7 : f32 to vector<2x1x8xf32>
    %10 = arith.select %7, %8, %9 : vector<2x1x8xi1>, vector<2x1x8xf32>
    %c0_8 = arith.constant 0 : index
    %c0_9 = arith.constant 0 : index
    %c0_10 = arith.constant 0 : index
    %11 = vector.load %arg8[%c0_8, %c0_9, %c0_10] : memref<1x1x32xf32, #tpu.memory_space<vmem>>, vector<1x1x32xf32>
    %12 = vector.shape_cast %11 : vector<1x1x32xf32> to vector<1x32xf32>
    %c0_11 = arith.constant 0 : index
    %c0_12 = arith.constant 0 : index
    %c0_13 = arith.constant 0 : index
    %13 = vector.load %arg9[%c0_11, %c0_12, %c0_13] : memref<1x1x32xf32, #tpu.memory_space<vmem>>, vector<1x1x32xf32>
    %14 = vector.shape_cast %13 : vector<1x1x32xf32> to vector<1x32xf32>
    %cst_14 = arith.constant dense<0.000000e+00> : vector<16xf32>
    %15 = vector.multi_reduction <add>, %4, %cst_14 [1] : vector<16x32xf32> to vector<16xf32>
    %16 = vector.shape_cast %15 : vector<16xf32> to vector<16x1xf32>
    %cst_15 = arith.constant 3.200000e+01 : f32
    %17 = vector.broadcast %cst_15 : f32 to vector<16x1xf32>
    %18 = arith.divf %16, %17 : vector<16x1xf32>
    %19 = vector.broadcast %18 : vector<16x1xf32> to vector<16x32xf32>
    %20 = arith.subf %4, %19 : vector<16x32xf32>
    %21 = arith.mulf %20, %20 : vector<16x32xf32>
    %cst_16 = arith.constant dense<0.000000e+00> : vector<16xf32>
    %22 = vector.multi_reduction <add>, %21, %cst_16 [1] : vector<16x32xf32> to vector<16xf32>
    %23 = vector.shape_cast %22 : vector<16xf32> to vector<16x1xf32>
    %cst_17 = arith.constant 3.200000e+01 : f32
    %24 = vector.broadcast %cst_17 : f32 to vector<16x1xf32>
    %25 = arith.divf %23, %24 : vector<16x1xf32>
    %26 = vector.broadcast %18 : vector<16x1xf32> to vector<16x32xf32>
    %27 = arith.subf %4, %26 : vector<16x32xf32>
    %cst_18 = arith.constant 9.99999974E-6 : f32
    %28 = vector.broadcast %cst_18 : f32 to vector<16x1xf32>
    %29 = arith.addf %25, %28 : vector<16x1xf32>
    %30 = math.rsqrt %29 : vector<16x1xf32>
    %31 = vector.broadcast %30 : vector<16x1xf32> to vector<16x32xf32>
    %32 = arith.mulf %27, %31 : vector<16x32xf32>
    %33 = vector.broadcast %12 : vector<1x32xf32> to vector<16x32xf32>
    %34 = arith.mulf %32, %33 : vector<16x32xf32>
    %35 = vector.broadcast %14 : vector<1x32xf32> to vector<16x32xf32>
    %36 = arith.addf %34, %35 : vector<16x32xf32>
    %37 = arith.truncf %36 : vector<16x32xf32> to vector<16x32xbf16>
    %c0_19 = arith.constant 0 : index
    %c0_20 = arith.constant 0 : index
    %c0_21 = arith.constant 0 : index
    %c0_22 = arith.constant 0 : index
    %38 = vector.load %arg10[%c0_19, %c0_20, %c0_21, %c0_22] : memref<1x4x32x8xbf16, #tpu.memory_space<vmem>>, vector<1x1x32x8xbf16>
    %39 = vector.shape_cast %38 : vector<1x1x32x8xbf16> to vector<32x8xbf16>
    %cst_23 = arith.constant dense<0.000000e+00> : vector<16x8xf32>
    %40 = tpu.matmul %37, %39, %cst_23 {dimension_numbers = #tpu.dot_dimension_numbers<[1], [0], [0], [1], [0, 0, 1, 1], [], []>} : vector<16x32xbf16>, vector<32x8xbf16>, vector<16x8xf32> -> vector<16x8xf32>
    %c0_24 = arith.constant 0 : index
    %c0_25 = arith.constant 0 : index
    %c0_26 = arith.constant 0 : index
    %c0_27 = arith.constant 0 : index
    %41 = vector.load %arg11[%c0_24, %c0_25, %c0_26, %c0_27] : memref<1x4x1x8xf32, #tpu.memory_space<vmem>>, vector<1x1x1x8xf32>
    %42 = vector.shape_cast %41 : vector<1x1x1x8xf32> to vector<1x8xf32>
    %43 = vector.broadcast %42 : vector<1x8xf32> to vector<16x8xf32>
    %44 = arith.addf %40, %43 : vector<16x8xf32>
    %45 = arith.truncf %44 : vector<16x8xf32> to vector<16x8xbf16>
    %c0_28 = arith.constant 0 : index
    %c0_29 = arith.constant 0 : index
    %c0_30 = arith.constant 0 : index
    %c0_31 = arith.constant 0 : index
    %46 = vector.load %arg12[%c0_28, %c0_29, %c0_30, %c0_31] : memref<1x4x32x8xbf16, #tpu.memory_space<vmem>>, vector<1x1x32x8xbf16>
    %47 = vector.shape_cast %46 : vector<1x1x32x8xbf16> to vector<32x8xbf16>
    %cst_32 = arith.constant dense<0.000000e+00> : vector<16x8xf32>
    %48 = tpu.matmul %37, %47, %cst_32 {dimension_numbers = #tpu.dot_dimension_numbers<[1], [0], [0], [1], [0, 0, 1, 1], [], []>} : vector<16x32xbf16>, vector<32x8xbf16>, vector<16x8xf32> -> vector<16x8xf32>
    %c0_33 = arith.constant 0 : index
    %c0_34 = arith.constant 0 : index
    %c0_35 = arith.constant 0 : index
    %c0_36 = arith.constant 0 : index
    %49 = vector.load %arg13[%c0_33, %c0_34, %c0_35, %c0_36] : memref<1x4x1x8xf32, #tpu.memory_space<vmem>>, vector<1x1x1x8xf32>
    %50 = vector.shape_cast %49 : vector<1x1x1x8xf32> to vector<1x8xf32>
    %51 = vector.broadcast %50 : vector<1x8xf32> to vector<16x8xf32>
    %52 = arith.addf %48, %51 : vector<16x8xf32>
    %53 = arith.truncf %52 : vector<16x8xf32> to vector<16x8xbf16>
    %c0_37 = arith.constant 0 : index
    %c0_38 = arith.constant 0 : index
    %c0_39 = arith.constant 0 : index
    %c0_40 = arith.constant 0 : index
    %54 = vector.load %arg14[%c0_37, %c0_38, %c0_39, %c0_40] : memref<1x4x32x8xbf16, #tpu.memory_space<vmem>>, vector<1x1x32x8xbf16>
    %55 = vector.shape_cast %54 : vector<1x1x32x8xbf16> to vector<32x8xbf16>
    %cst_41 = arith.constant dense<0.000000e+00> : vector<16x8xf32>
    %56 = tpu.matmul %37, %55, %cst_41 {dimension_numbers = #tpu.dot_dimension_numbers<[1], [0], [0], [1], [0, 0, 1, 1], [], []>} : vector<16x32xbf16>, vector<32x8xbf16>, vector<16x8xf32> -> vector<16x8xf32>
    %c0_42 = arith.constant 0 : index
    %c0_43 = arith.constant 0 : index
    %c0_44 = arith.constant 0 : index
    %c0_45 = arith.constant 0 : index
    %57 = vector.load %arg15[%c0_42, %c0_43, %c0_44, %c0_45] : memref<1x4x1x8xf32, #tpu.memory_space<vmem>>, vector<1x1x1x8xf32>
    %58 = vector.shape_cast %57 : vector<1x1x1x8xf32> to vector<1x8xf32>
    %59 = vector.broadcast %58 : vector<1x8xf32> to vector<16x8xf32>
    %60 = arith.addf %56, %59 : vector<16x8xf32>
    %61 = arith.truncf %60 : vector<16x8xf32> to vector<16x8xbf16>
    %c0_46 = arith.constant 0 : index
    %c1 = arith.constant 1 : index
    %c0_47 = arith.constant 0 : index
    %c0_48 = arith.constant 0 : index
    %62 = vector.load %arg10[%c0_46, %c1, %c0_47, %c0_48] : memref<1x4x32x8xbf16, #tpu.memory_space<vmem>>, vector<1x1x32x8xbf16>
    %63 = vector.shape_cast %62 : vector<1x1x32x8xbf16> to vector<32x8xbf16>
    %cst_49 = arith.constant dense<0.000000e+00> : vector<16x8xf32>
    %64 = tpu.matmul %37, %63, %cst_49 {dimension_numbers = #tpu.dot_dimension_numbers<[1], [0], [0], [1], [0, 0, 1, 1], [], []>} : vector<16x32xbf16>, vector<32x8xbf16>, vector<16x8xf32> -> vector<16x8xf32>
    %c0_50 = arith.constant 0 : index
    %c1_51 = arith.constant 1 : index
    %c0_52 = arith.constant 0 : index
    %c0_53 = arith.constant 0 : index
    %65 = vector.load %arg11[%c0_50, %c1_51, %c0_52, %c0_53] : memref<1x4x1x8xf32, #tpu.memory_space<vmem>>, vector<1x1x1x8xf32>
    %66 = vector.shape_cast %65 : vector<1x1x1x8xf32> to vector<1x8xf32>
    %67 = vector.broadcast %66 : vector<1x8xf32> to vector<16x8xf32>
    %68 = arith.addf %64, %67 : vector<16x8xf32>
    %69 = arith.truncf %68 : vector<16x8xf32> to vector<16x8xbf16>
    %c0_54 = arith.constant 0 : index
    %c1_55 = arith.constant 1 : index
    %c0_56 = arith.constant 0 : index
    %c0_57 = arith.constant 0 : index
    %70 = vector.load %arg12[%c0_54, %c1_55, %c0_56, %c0_57] : memref<1x4x32x8xbf16, #tpu.memory_space<vmem>>, vector<1x1x32x8xbf16>
    %71 = vector.shape_cast %70 : vector<1x1x32x8xbf16> to vector<32x8xbf16>
    %cst_58 = arith.constant dense<0.000000e+00> : vector<16x8xf32>
    %72 = tpu.matmul %37, %71, %cst_58 {dimension_numbers = #tpu.dot_dimension_numbers<[1], [0], [0], [1], [0, 0, 1, 1], [], []>} : vector<16x32xbf16>, vector<32x8xbf16>, vector<16x8xf32> -> vector<16x8xf32>
    %c0_59 = arith.constant 0 : index
    %c1_60 = arith.constant 1 : index
    %c0_61 = arith.constant 0 : index
    %c0_62 = arith.constant 0 : index
    %73 = vector.load %arg13[%c0_59, %c1_60, %c0_61, %c0_62] : memref<1x4x1x8xf32, #tpu.memory_space<vmem>>, vector<1x1x1x8xf32>
    %74 = vector.shape_cast %73 : vector<1x1x1x8xf32> to vector<1x8xf32>
    %75 = vector.broadcast %74 : vector<1x8xf32> to vector<16x8xf32>
    %76 = arith.addf %72, %75 : vector<16x8xf32>
    %77 = arith.truncf %76 : vector<16x8xf32> to vector<16x8xbf16>
    %c0_63 = arith.constant 0 : index
    %c1_64 = arith.constant 1 : index
    %c0_65 = arith.constant 0 : index
    %c0_66 = arith.constant 0 : index
    %78 = vector.load %arg14[%c0_63, %c1_64, %c0_65, %c0_66] : memref<1x4x32x8xbf16, #tpu.memory_space<vmem>>, vector<1x1x32x8xbf16>
    %79 = vector.shape_cast %78 : vector<1x1x32x8xbf16> to vector<32x8xbf16>
    %cst_67 = arith.constant dense<0.000000e+00> : vector<16x8xf32>
    %80 = tpu.matmul %37, %79, %cst_67 {dimension_numbers = #tpu.dot_dimension_numbers<[1], [0], [0], [1], [0, 0, 1, 1], [], []>} : vector<16x32xbf16>, vector<32x8xbf16>, vector<16x8xf32> -> vector<16x8xf32>
    %c0_68 = arith.constant 0 : index
    %c1_69 = arith.constant 1 : index
    %c0_70 = arith.constant 0 : index
    %c0_71 = arith.constant 0 : index
    %81 = vector.load %arg15[%c0_68, %c1_69, %c0_70, %c0_71] : memref<1x4x1x8xf32, #tpu.memory_space<vmem>>, vector<1x1x1x8xf32>
    %82 = vector.shape_cast %81 : vector<1x1x1x8xf32> to vector<1x8xf32>
    %83 = vector.broadcast %82 : vector<1x8xf32> to vector<16x8xf32>
    %84 = arith.addf %80, %83 : vector<16x8xf32>
    %85 = arith.truncf %84 : vector<16x8xf32> to vector<16x8xbf16>
    %c0_72 = arith.constant 0 : index
    %c2 = arith.constant 2 : index
    %c0_73 = arith.constant 0 : index
    %c0_74 = arith.constant 0 : index
    %86 = vector.load %arg10[%c0_72, %c2, %c0_73, %c0_74] : memref<1x4x32x8xbf16, #tpu.memory_space<vmem>>, vector<1x1x32x8xbf16>
    %87 = vector.shape_cast %86 : vector<1x1x32x8xbf16> to vector<32x8xbf16>
    %cst_75 = arith.constant dense<0.000000e+00> : vector<16x8xf32>
    %88 = tpu.matmul %37, %87, %cst_75 {dimension_numbers = #tpu.dot_dimension_numbers<[1], [0], [0], [1], [0, 0, 1, 1], [], []>} : vector<16x32xbf16>, vector<32x8xbf16>, vector<16x8xf32> -> vector<16x8xf32>
    %c0_76 = arith.constant 0 : index
    %c2_77 = arith.constant 2 : index
    %c0_78 = arith.constant 0 : index
    %c0_79 = arith.constant 0 : index
    %89 = vector.load %arg11[%c0_76, %c2_77, %c0_78, %c0_79] : memref<1x4x1x8xf32, #tpu.memory_space<vmem>>, vector<1x1x1x8xf32>
    %90 = vector.shape_cast %89 : vector<1x1x1x8xf32> to vector<1x8xf32>
    %91 = vector.broadcast %90 : vector<1x8xf32> to vector<16x8xf32>
    %92 = arith.addf %88, %91 : vector<16x8xf32>
    %93 = arith.truncf %92 : vector<16x8xf32> to vector<16x8xbf16>
    %c0_80 = arith.constant 0 : index
    %c2_81 = arith.constant 2 : index
    %c0_82 = arith.constant 0 : index
    %c0_83 = arith.constant 0 : index
    %94 = vector.load %arg12[%c0_80, %c2_81, %c0_82, %c0_83] : memref<1x4x32x8xbf16, #tpu.memory_space<vmem>>, vector<1x1x32x8xbf16>
    %95 = vector.shape_cast %94 : vector<1x1x32x8xbf16> to vector<32x8xbf16>
    %cst_84 = arith.constant dense<0.000000e+00> : vector<16x8xf32>
    %96 = tpu.matmul %37, %95, %cst_84 {dimension_numbers = #tpu.dot_dimension_numbers<[1], [0], [0], [1], [0, 0, 1, 1], [], []>} : vector<16x32xbf16>, vector<32x8xbf16>, vector<16x8xf32> -> vector<16x8xf32>
    %c0_85 = arith.constant 0 : index
    %c2_86 = arith.constant 2 : index
    %c0_87 = arith.constant 0 : index
    %c0_88 = arith.constant 0 : index
    %97 = vector.load %arg13[%c0_85, %c2_86, %c0_87, %c0_88] : memref<1x4x1x8xf32, #tpu.memory_space<vmem>>, vector<1x1x1x8xf32>
    %98 = vector.shape_cast %97 : vector<1x1x1x8xf32> to vector<1x8xf32>
    %99 = vector.broadcast %98 : vector<1x8xf32> to vector<16x8xf32>
    %100 = arith.addf %96, %99 : vector<16x8xf32>
    %101 = arith.truncf %100 : vector<16x8xf32> to vector<16x8xbf16>
    %c0_89 = arith.constant 0 : index
    %c2_90 = arith.constant 2 : index
    %c0_91 = arith.constant 0 : index
    %c0_92 = arith.constant 0 : index
    %102 = vector.load %arg14[%c0_89, %c2_90, %c0_91, %c0_92] : memref<1x4x32x8xbf16, #tpu.memory_space<vmem>>, vector<1x1x32x8xbf16>
    %103 = vector.shape_cast %102 : vector<1x1x32x8xbf16> to vector<32x8xbf16>
    %cst_93 = arith.constant dense<0.000000e+00> : vector<16x8xf32>
    %104 = tpu.matmul %37, %103, %cst_93 {dimension_numbers = #tpu.dot_dimension_numbers<[1], [0], [0], [1], [0, 0, 1, 1], [], []>} : vector<16x32xbf16>, vector<32x8xbf16>, vector<16x8xf32> -> vector<16x8xf32>
    %c0_94 = arith.constant 0 : index
    %c2_95 = arith.constant 2 : index
    %c0_96 = arith.constant 0 : index
    %c0_97 = arith.constant 0 : index
    %105 = vector.load %arg15[%c0_94, %c2_95, %c0_96, %c0_97] : memref<1x4x1x8xf32, #tpu.memory_space<vmem>>, vector<1x1x1x8xf32>
    %106 = vector.shape_cast %105 : vector<1x1x1x8xf32> to vector<1x8xf32>
    %107 = vector.broadcast %106 : vector<1x8xf32> to vector<16x8xf32>
    %108 = arith.addf %104, %107 : vector<16x8xf32>
    %109 = arith.truncf %108 : vector<16x8xf32> to vector<16x8xbf16>
    %c0_98 = arith.constant 0 : index
    %c3 = arith.constant 3 : index
    %c0_99 = arith.constant 0 : index
    %c0_100 = arith.constant 0 : index
    %110 = vector.load %arg10[%c0_98, %c3, %c0_99, %c0_100] : memref<1x4x32x8xbf16, #tpu.memory_space<vmem>>, vector<1x1x32x8xbf16>
    %111 = vector.shape_cast %110 : vector<1x1x32x8xbf16> to vector<32x8xbf16>
    %cst_101 = arith.constant dense<0.000000e+00> : vector<16x8xf32>
    %112 = tpu.matmul %37, %111, %cst_101 {dimension_numbers = #tpu.dot_dimension_numbers<[1], [0], [0], [1], [0, 0, 1, 1], [], []>} : vector<16x32xbf16>, vector<32x8xbf16>, vector<16x8xf32> -> vector<16x8xf32>
    %c0_102 = arith.constant 0 : index
    %c3_103 = arith.constant 3 : index
    %c0_104 = arith.constant 0 : index
    %c0_105 = arith.constant 0 : index
    %113 = vector.load %arg11[%c0_102, %c3_103, %c0_104, %c0_105] : memref<1x4x1x8xf32, #tpu.memory_space<vmem>>, vector<1x1x1x8xf32>
    %114 = vector.shape_cast %113 : vector<1x1x1x8xf32> to vector<1x8xf32>
    %115 = vector.broadcast %114 : vector<1x8xf32> to vector<16x8xf32>
    %116 = arith.addf %112, %115 : vector<16x8xf32>
    %117 = arith.truncf %116 : vector<16x8xf32> to vector<16x8xbf16>
    %c0_106 = arith.constant 0 : index
    %c3_107 = arith.constant 3 : index
    %c0_108 = arith.constant 0 : index
    %c0_109 = arith.constant 0 : index
    %118 = vector.load %arg12[%c0_106, %c3_107, %c0_108, %c0_109] : memref<1x4x32x8xbf16, #tpu.memory_space<vmem>>, vector<1x1x32x8xbf16>
    %119 = vector.shape_cast %118 : vector<1x1x32x8xbf16> to vector<32x8xbf16>
    %cst_110 = arith.constant dense<0.000000e+00> : vector<16x8xf32>
    %120 = tpu.matmul %37, %119, %cst_110 {dimension_numbers = #tpu.dot_dimension_numbers<[1], [0], [0], [1], [0, 0, 1, 1], [], []>} : vector<16x32xbf16>, vector<32x8xbf16>, vector<16x8xf32> -> vector<16x8xf32>
    %c0_111 = arith.constant 0 : index
    %c3_112 = arith.constant 3 : index
    %c0_113 = arith.constant 0 : index
    %c0_114 = arith.constant 0 : index
    %121 = vector.load %arg13[%c0_111, %c3_112, %c0_113, %c0_114] : memref<1x4x1x8xf32, #tpu.memory_space<vmem>>, vector<1x1x1x8xf32>
    %122 = vector.shape_cast %121 : vector<1x1x1x8xf32> to vector<1x8xf32>
    %123 = vector.broadcast %122 : vector<1x8xf32> to vector<16x8xf32>
    %124 = arith.addf %120, %123 : vector<16x8xf32>
    %125 = arith.truncf %124 : vector<16x8xf32> to vector<16x8xbf16>
    %c0_115 = arith.constant 0 : index
    %c3_116 = arith.constant 3 : index
    %c0_117 = arith.constant 0 : index
    %c0_118 = arith.constant 0 : index
    %126 = vector.load %arg14[%c0_115, %c3_116, %c0_117, %c0_118] : memref<1x4x32x8xbf16, #tpu.memory_space<vmem>>, vector<1x1x32x8xbf16>
    %127 = vector.shape_cast %126 : vector<1x1x32x8xbf16> to vector<32x8xbf16>
    %cst_119 = arith.constant dense<0.000000e+00> : vector<16x8xf32>
    %128 = tpu.matmul %37, %127, %cst_119 {dimension_numbers = #tpu.dot_dimension_numbers<[1], [0], [0], [1], [0, 0, 1, 1], [], []>} : vector<16x32xbf16>, vector<32x8xbf16>, vector<16x8xf32> -> vector<16x8xf32>
    %c0_120 = arith.constant 0 : index
    %c3_121 = arith.constant 3 : index
    %c0_122 = arith.constant 0 : index
    %c0_123 = arith.constant 0 : index
    %129 = vector.load %arg15[%c0_120, %c3_121, %c0_122, %c0_123] : memref<1x4x1x8xf32, #tpu.memory_space<vmem>>, vector<1x1x1x8xf32>
    %130 = vector.shape_cast %129 : vector<1x1x1x8xf32> to vector<1x8xf32>
    %131 = vector.broadcast %130 : vector<1x8xf32> to vector<16x8xf32>
    %132 = arith.addf %128, %131 : vector<16x8xf32>
    %133 = arith.truncf %132 : vector<16x8xf32> to vector<16x8xbf16>
    %134 = vector.shape_cast %45 : vector<16x8xbf16> to vector<1x16x8xbf16>
    %135 = vector.shape_cast %69 : vector<16x8xbf16> to vector<1x16x8xbf16>
    %136 = vector.shape_cast %93 : vector<16x8xbf16> to vector<1x16x8xbf16>
    %137 = vector.shape_cast %117 : vector<16x8xbf16> to vector<1x16x8xbf16>
    %138 = tpu.concatenate %134, %135, %136, %137 in 0 : vector<1x16x8xbf16>, vector<1x16x8xbf16>, vector<1x16x8xbf16>, vector<1x16x8xbf16> -> vector<4x16x8xbf16>
    %139 = vector.shape_cast %138 : vector<4x16x8xbf16> to vector<8x8x8xbf16>
    %140 = vector.shape_cast %53 : vector<16x8xbf16> to vector<1x16x8xbf16>
    %141 = vector.shape_cast %77 : vector<16x8xbf16> to vector<1x16x8xbf16>
    %142 = vector.shape_cast %101 : vector<16x8xbf16> to vector<1x16x8xbf16>
    %143 = vector.shape_cast %125 : vector<16x8xbf16> to vector<1x16x8xbf16>
    %144 = tpu.concatenate %140, %141, %142, %143 in 0 : vector<1x16x8xbf16>, vector<1x16x8xbf16>, vector<1x16x8xbf16>, vector<1x16x8xbf16> -> vector<4x16x8xbf16>
    %145 = vector.shape_cast %144 : vector<4x16x8xbf16> to vector<8x8x8xbf16>
    %146 = vector.shape_cast %61 : vector<16x8xbf16> to vector<1x16x8xbf16>
    %147 = vector.shape_cast %85 : vector<16x8xbf16> to vector<1x16x8xbf16>
    %148 = vector.shape_cast %109 : vector<16x8xbf16> to vector<1x16x8xbf16>
    %149 = vector.shape_cast %133 : vector<16x8xbf16> to vector<1x16x8xbf16>
    %150 = tpu.concatenate %146, %147, %148, %149 in 0 : vector<1x16x8xbf16>, vector<1x16x8xbf16>, vector<1x16x8xbf16>, vector<1x16x8xbf16> -> vector<4x16x8xbf16>
    %151 = vector.shape_cast %150 : vector<4x16x8xbf16> to vector<8x8x8xbf16>
    "tpu.trace_start"() <{level = 10 : i32, message = "gqd,gkd->gqk"}> : () -> ()
    %cst_124 = arith.constant dense<0.000000e+00> : vector<8x8x8xf32>
    %152 = tpu.matmul %139, %145, %cst_124 {dimension_numbers = #tpu.dot_dimension_numbers<[2], [2], [1], [1], [0, 0, 0, 1, 1, 1], [0], [0]>} : vector<8x8x8xbf16>, vector<8x8x8xbf16>, vector<8x8x8xf32> -> vector<8x8x8xf32>
    "tpu.trace_stop"() : () -> ()
    %153 = vector.shape_cast %152 : vector<8x8x8xf32> to vector<4x2x8x8xf32>
    %154 = vector.shape_cast %10 : vector<2x1x8xf32> to vector<1x2x1x8xf32>
    %155 = vector.broadcast %154 : vector<1x2x1x8xf32> to vector<4x2x8x8xf32>
    %156 = arith.addf %153, %155 : vector<4x2x8x8xf32>
    %cst_125 = arith.constant dense<0xFF800000> : vector<4x2x8xf32>
    %157 = vector.multi_reduction <maximumf>, %156, %cst_125 [3] : vector<4x2x8x8xf32> to vector<4x2x8xf32>
    %158 = vector.shape_cast %157 : vector<4x2x8xf32> to vector<4x2x8x1xf32>
    %159 = vector.broadcast %158 : vector<4x2x8x1xf32> to vector<4x2x8x8xf32>
    %160 = arith.subf %156, %159 : vector<4x2x8x8xf32>
    %161 = math.exp %160 : vector<4x2x8x8xf32>
    %cst_126 = arith.constant dense<0.000000e+00> : vector<4x2x8xf32>
    %162 = vector.multi_reduction <add>, %161, %cst_126 [3] : vector<4x2x8x8xf32> to vector<4x2x8xf32>
    %163 = vector.shape_cast %162 : vector<4x2x8xf32> to vector<4x2x8x1xf32>
    %164 = tpu.reciprocal %163 {approx = true} : vector<4x2x8x1xf32> -> vector<4x2x8x1xf32>
    %165 = vector.broadcast %164 : vector<4x2x8x1xf32> to vector<4x2x8x8xf32>
    %166 = arith.mulf %161, %165 : vector<4x2x8x8xf32>
    %167 = arith.truncf %166 : vector<4x2x8x8xf32> to vector<4x2x8x8xbf16>
    %168 = vector.shape_cast %167 : vector<4x2x8x8xbf16> to vector<8x8x8xbf16>
    "tpu.trace_start"() <{level = 10 : i32, message = "gqk,gkd->gqd"}> : () -> ()
    %cst_127 = arith.constant dense<0.000000e+00> : vector<8x8x8xf32>
    %169 = tpu.matmul %168, %151, %cst_127 {dimension_numbers = #tpu.dot_dimension_numbers<[2], [1], [1], [2], [0, 0, 0, 1, 1, 2], [0], [0]>} : vector<8x8x8xbf16>, vector<8x8x8xbf16>, vector<8x8x8xf32> -> vector<8x8x8xf32>
    "tpu.trace_stop"() : () -> ()
    %170 = arith.truncf %169 : vector<8x8x8xf32> to vector<8x8x8xbf16>
    %171 = vector.shape_cast %170 : vector<8x8x8xbf16> to vector<4x16x8xbf16>
    %cst_128 = arith.constant 0.000000e+00 : f32
    %172 = vector.broadcast %cst_128 : f32 to vector<16x32xf32>
    %173 = vector.extract_strided_slice %171 {offsets = [0, 0, 0], sizes = [1, 16, 8], strides = [1, 1, 1]} : vector<4x16x8xbf16> to vector<1x16x8xbf16>
    %174 = vector.shape_cast %173 : vector<1x16x8xbf16> to vector<16x8xbf16>
    %c0_129 = arith.constant 0 : index
    %c0_130 = arith.constant 0 : index
    %c0_131 = arith.constant 0 : index
    %c0_132 = arith.constant 0 : index
    %175 = vector.load %arg16[%c0_129, %c0_130, %c0_131, %c0_132] : memref<1x4x8x32xbf16, #tpu.memory_space<vmem>>, vector<1x1x8x32xbf16>
    %176 = vector.shape_cast %175 : vector<1x1x8x32xbf16> to vector<8x32xbf16>
    %cst_133 = arith.constant dense<0.000000e+00> : vector<16x32xf32>
    %177 = tpu.matmul %174, %176, %cst_133 {dimension_numbers = #tpu.dot_dimension_numbers<[1], [0], [0], [1], [0, 0, 1, 1], [], []>} : vector<16x8xbf16>, vector<8x32xbf16>, vector<16x32xf32> -> vector<16x32xf32>
    %178 = arith.addf %172, %177 : vector<16x32xf32>
    %179 = vector.extract_strided_slice %171 {offsets = [1, 0, 0], sizes = [1, 16, 8], strides = [1, 1, 1]} : vector<4x16x8xbf16> to vector<1x16x8xbf16>
    %180 = vector.shape_cast %179 : vector<1x16x8xbf16> to vector<16x8xbf16>
    %c0_134 = arith.constant 0 : index
    %c1_135 = arith.constant 1 : index
    %c0_136 = arith.constant 0 : index
    %c0_137 = arith.constant 0 : index
    %181 = vector.load %arg16[%c0_134, %c1_135, %c0_136, %c0_137] : memref<1x4x8x32xbf16, #tpu.memory_space<vmem>>, vector<1x1x8x32xbf16>
    %182 = vector.shape_cast %181 : vector<1x1x8x32xbf16> to vector<8x32xbf16>
    %cst_138 = arith.constant dense<0.000000e+00> : vector<16x32xf32>
    %183 = tpu.matmul %180, %182, %cst_138 {dimension_numbers = #tpu.dot_dimension_numbers<[1], [0], [0], [1], [0, 0, 1, 1], [], []>} : vector<16x8xbf16>, vector<8x32xbf16>, vector<16x32xf32> -> vector<16x32xf32>
    %184 = arith.addf %178, %183 : vector<16x32xf32>
    %185 = vector.extract_strided_slice %171 {offsets = [2, 0, 0], sizes = [1, 16, 8], strides = [1, 1, 1]} : vector<4x16x8xbf16> to vector<1x16x8xbf16>
    %186 = vector.shape_cast %185 : vector<1x16x8xbf16> to vector<16x8xbf16>
    %c0_139 = arith.constant 0 : index
    %c2_140 = arith.constant 2 : index
    %c0_141 = arith.constant 0 : index
    %c0_142 = arith.constant 0 : index
    %187 = vector.load %arg16[%c0_139, %c2_140, %c0_141, %c0_142] : memref<1x4x8x32xbf16, #tpu.memory_space<vmem>>, vector<1x1x8x32xbf16>
    %188 = vector.shape_cast %187 : vector<1x1x8x32xbf16> to vector<8x32xbf16>
    %cst_143 = arith.constant dense<0.000000e+00> : vector<16x32xf32>
    %189 = tpu.matmul %186, %188, %cst_143 {dimension_numbers = #tpu.dot_dimension_numbers<[1], [0], [0], [1], [0, 0, 1, 1], [], []>} : vector<16x8xbf16>, vector<8x32xbf16>, vector<16x32xf32> -> vector<16x32xf32>
    %190 = arith.addf %184, %189 : vector<16x32xf32>
    %191 = vector.extract_strided_slice %171 {offsets = [3, 0, 0], sizes = [1, 16, 8], strides = [1, 1, 1]} : vector<4x16x8xbf16> to vector<1x16x8xbf16>
    %192 = vector.shape_cast %191 : vector<1x16x8xbf16> to vector<16x8xbf16>
    %c0_144 = arith.constant 0 : index
    %c3_145 = arith.constant 3 : index
    %c0_146 = arith.constant 0 : index
    %c0_147 = arith.constant 0 : index
    %193 = vector.load %arg16[%c0_144, %c3_145, %c0_146, %c0_147] : memref<1x4x8x32xbf16, #tpu.memory_space<vmem>>, vector<1x1x8x32xbf16>
    %194 = vector.shape_cast %193 : vector<1x1x8x32xbf16> to vector<8x32xbf16>
    %cst_148 = arith.constant dense<0.000000e+00> : vector<16x32xf32>
    %195 = tpu.matmul %192, %194, %cst_148 {dimension_numbers = #tpu.dot_dimension_numbers<[1], [0], [0], [1], [0, 0, 1, 1], [], []>} : vector<16x8xbf16>, vector<8x32xbf16>, vector<16x32xf32> -> vector<16x32xf32>
    %196 = arith.addf %190, %195 : vector<16x32xf32>
    %c0_149 = arith.constant 0 : index
    %c0_150 = arith.constant 0 : index
    %c0_151 = arith.constant 0 : index
    %197 = vector.load %arg17[%c0_149, %c0_150, %c0_151] : memref<1x1x32xf32, #tpu.memory_space<vmem>>, vector<1x1x32xf32>
    %198 = vector.shape_cast %197 : vector<1x1x32xf32> to vector<1x32xf32>
    %199 = vector.broadcast %198 : vector<1x32xf32> to vector<16x32xf32>
    %200 = arith.addf %196, %199 : vector<16x32xf32>
    %201 = arith.addf %4, %200 : vector<16x32xf32>
    %c0_152 = arith.constant 0 : index
    %c0_153 = arith.constant 0 : index
    %c0_154 = arith.constant 0 : index
    %202 = vector.load %arg18[%c0_152, %c0_153, %c0_154] : memref<1x1x32xf32, #tpu.memory_space<vmem>>, vector<1x1x32xf32>
    %203 = vector.shape_cast %202 : vector<1x1x32xf32> to vector<1x32xf32>
    %c0_155 = arith.constant 0 : index
    %c0_156 = arith.constant 0 : index
    %c0_157 = arith.constant 0 : index
    %204 = vector.load %arg19[%c0_155, %c0_156, %c0_157] : memref<1x1x32xf32, #tpu.memory_space<vmem>>, vector<1x1x32xf32>
    %205 = vector.shape_cast %204 : vector<1x1x32xf32> to vector<1x32xf32>
    %cst_158 = arith.constant dense<0.000000e+00> : vector<16xf32>
    %206 = vector.multi_reduction <add>, %201, %cst_158 [1] : vector<16x32xf32> to vector<16xf32>
    %207 = vector.shape_cast %206 : vector<16xf32> to vector<16x1xf32>
    %cst_159 = arith.constant 3.200000e+01 : f32
    %208 = vector.broadcast %cst_159 : f32 to vector<16x1xf32>
    %209 = arith.divf %207, %208 : vector<16x1xf32>
    %210 = vector.broadcast %209 : vector<16x1xf32> to vector<16x32xf32>
    %211 = arith.subf %201, %210 : vector<16x32xf32>
    %212 = arith.mulf %211, %211 : vector<16x32xf32>
    %cst_160 = arith.constant dense<0.000000e+00> : vector<16xf32>
    %213 = vector.multi_reduction <add>, %212, %cst_160 [1] : vector<16x32xf32> to vector<16xf32>
    %214 = vector.shape_cast %213 : vector<16xf32> to vector<16x1xf32>
    %cst_161 = arith.constant 3.200000e+01 : f32
    %215 = vector.broadcast %cst_161 : f32 to vector<16x1xf32>
    %216 = arith.divf %214, %215 : vector<16x1xf32>
    %217 = vector.broadcast %209 : vector<16x1xf32> to vector<16x32xf32>
    %218 = arith.subf %201, %217 : vector<16x32xf32>
    %cst_162 = arith.constant 9.99999974E-6 : f32
    %219 = vector.broadcast %cst_162 : f32 to vector<16x1xf32>
    %220 = arith.addf %216, %219 : vector<16x1xf32>
    %221 = math.rsqrt %220 : vector<16x1xf32>
    %222 = vector.broadcast %221 : vector<16x1xf32> to vector<16x32xf32>
    %223 = arith.mulf %218, %222 : vector<16x32xf32>
    %224 = vector.broadcast %203 : vector<1x32xf32> to vector<16x32xf32>
    %225 = arith.mulf %223, %224 : vector<16x32xf32>
    %226 = vector.broadcast %205 : vector<1x32xf32> to vector<16x32xf32>
    %227 = arith.addf %225, %226 : vector<16x32xf32>
    %228 = arith.truncf %227 : vector<16x32xf32> to vector<16x32xbf16>
    %c0_163 = arith.constant 0 : index
    %c0_164 = arith.constant 0 : index
    %c0_165 = arith.constant 0 : index
    %229 = vector.load %arg20[%c0_163, %c0_164, %c0_165] : memref<1x32x128xbf16, #tpu.memory_space<vmem>>, vector<1x32x128xbf16>
    %230 = vector.shape_cast %229 : vector<1x32x128xbf16> to vector<32x128xbf16>
    %cst_166 = arith.constant dense<0.000000e+00> : vector<16x128xf32>
    %231 = tpu.matmul %228, %230, %cst_166 {dimension_numbers = #tpu.dot_dimension_numbers<[1], [0], [0], [1], [0, 0, 1, 1], [], []>} : vector<16x32xbf16>, vector<32x128xbf16>, vector<16x128xf32> -> vector<16x128xf32>
    %c0_167 = arith.constant 0 : index
    %c0_168 = arith.constant 0 : index
    %c0_169 = arith.constant 0 : index
    %232 = vector.load %arg21[%c0_167, %c0_168, %c0_169] : memref<1x1x128xf32, #tpu.memory_space<vmem>>, vector<1x1x128xf32>
    %233 = vector.shape_cast %232 : vector<1x1x128xf32> to vector<1x128xf32>
    %234 = vector.broadcast %233 : vector<1x128xf32> to vector<16x128xf32>
    %235 = arith.addf %231, %234 : vector<16x128xf32>
    %cst_170 = arith.constant 1.702000e+00 : f32
    %236 = vector.broadcast %cst_170 : f32 to vector<16x128xf32>
    %237 = arith.mulf %236, %235 : vector<16x128xf32>
    %238 = arith.negf %237 : vector<16x128xf32>
    %239 = math.exp %238 : vector<16x128xf32>
    %cst_171 = arith.constant 1.000000e+00 : f32
    %240 = vector.broadcast %cst_171 : f32 to vector<16x128xf32>
    %241 = arith.addf %240, %239 : vector<16x128xf32>
    %242 = arith.divf %240, %241 : vector<16x128xf32>
    %243 = arith.mulf %235, %242 : vector<16x128xf32>
    %244 = arith.truncf %243 : vector<16x128xf32> to vector<16x128xbf16>
    %c0_172 = arith.constant 0 : index
    %c0_173 = arith.constant 0 : index
    %c0_174 = arith.constant 0 : index
    %245 = vector.load %arg22[%c0_172, %c0_173, %c0_174] : memref<1x128x32xbf16, #tpu.memory_space<vmem>>, vector<1x128x32xbf16>
    %246 = vector.shape_cast %245 : vector<1x128x32xbf16> to vector<128x32xbf16>
    %cst_175 = arith.constant dense<0.000000e+00> : vector<16x32xf32>
    %247 = tpu.matmul %244, %246, %cst_175 {dimension_numbers = #tpu.dot_dimension_numbers<[1], [0], [0], [1], [0, 0, 1, 1], [], []>} : vector<16x128xbf16>, vector<128x32xbf16>, vector<16x32xf32> -> vector<16x32xf32>
    %c0_176 = arith.constant 0 : index
    %c0_177 = arith.constant 0 : index
    %c0_178 = arith.constant 0 : index
    %248 = vector.load %arg23[%c0_176, %c0_177, %c0_178] : memref<1x1x32xf32, #tpu.memory_space<vmem>>, vector<1x1x32xf32>
    %249 = vector.shape_cast %248 : vector<1x1x32xf32> to vector<1x32xf32>
    %250 = vector.broadcast %249 : vector<1x32xf32> to vector<16x32xf32>
    %251 = arith.addf %247, %250 : vector<16x32xf32>
    %252 = arith.addf %201, %251 : vector<16x32xf32>
    %253 = vector.shape_cast %252 : vector<16x32xf32> to vector<2x8x32xf32>
    %c0_179 = arith.constant 0 : index
    %c0_180 = arith.constant 0 : index
    %c0_181 = arith.constant 0 : index
    %254 = vector.load %arg24[%c0_179, %c0_180, %c0_181] : memref<2x8x32xf32, #tpu.memory_space<vmem>>, vector<2x8x32xf32>
    tpu.vector_store %arg24[%c0_179, %c0_180, %c0_181], %253 {strides = array<i32>} : memref<2x8x32xf32, #tpu.memory_space<vmem>>, vector<2x8x32xf32>,
    %c1_i32 = arith.constant 1 : i32
    %255 = arith.cmpi eq, %arg1, %c1_i32 : i32
    %256 = arith.extui %255 : i1 to i32
    %c0_i32_182 = arith.constant 0 : i32
    %257 = arith.cmpi ne, %256, %c0_i32_182 : i32
    scf.if %257 {
      %c0_183 = arith.constant 0 : index
      %c0_184 = arith.constant 0 : index
      %258 = vector.load %arg6[%c0_183, %c0_184] : memref<1x32xf32, #tpu.memory_space<vmem>>, vector<1x32xf32>
      %c0_185 = arith.constant 0 : index
      %c0_186 = arith.constant 0 : index
      %259 = vector.load %arg7[%c0_185, %c0_186] : memref<1x32xf32, #tpu.memory_space<vmem>>, vector<1x32xf32>
      %cst_187 = arith.constant dense<0.000000e+00> : vector<2x8xf32>
      %260 = vector.multi_reduction <add>, %253, %cst_187 [2] : vector<2x8x32xf32> to vector<2x8xf32>
      %261 = vector.shape_cast %260 : vector<2x8xf32> to vector<2x8x1xf32>
      %cst_188 = arith.constant 3.200000e+01 : f32
      %262 = vector.broadcast %cst_188 : f32 to vector<2x8x1xf32>
      %263 = arith.divf %261, %262 : vector<2x8x1xf32>
      %264 = vector.broadcast %263 : vector<2x8x1xf32> to vector<2x8x32xf32>
      %265 = arith.subf %253, %264 : vector<2x8x32xf32>
      %266 = arith.mulf %265, %265 : vector<2x8x32xf32>
      %cst_189 = arith.constant dense<0.000000e+00> : vector<2x8xf32>
      %267 = vector.multi_reduction <add>, %266, %cst_189 [2] : vector<2x8x32xf32> to vector<2x8xf32>
      %268 = vector.shape_cast %267 : vector<2x8xf32> to vector<2x8x1xf32>
      %cst_190 = arith.constant 3.200000e+01 : f32
      %269 = vector.broadcast %cst_190 : f32 to vector<2x8x1xf32>
      %270 = arith.divf %268, %269 : vector<2x8x1xf32>
      %271 = vector.broadcast %263 : vector<2x8x1xf32> to vector<2x8x32xf32>
      %272 = arith.subf %253, %271 : vector<2x8x32xf32>
      %cst_191 = arith.constant 9.99999974E-6 : f32
      %273 = vector.broadcast %cst_191 : f32 to vector<2x8x1xf32>
      %274 = arith.addf %270, %273 : vector<2x8x1xf32>
      %275 = math.rsqrt %274 : vector<2x8x1xf32>
      %276 = vector.broadcast %275 : vector<2x8x1xf32> to vector<2x8x32xf32>
      %277 = arith.mulf %272, %276 : vector<2x8x32xf32>
      %278 = vector.shape_cast %258 : vector<1x32xf32> to vector<1x1x32xf32>
      %279 = vector.broadcast %278 : vector<1x1x32xf32> to vector<2x8x32xf32>
      %280 = arith.mulf %277, %279 : vector<2x8x32xf32>
      %281 = vector.shape_cast %259 : vector<1x32xf32> to vector<1x1x32xf32>
      %282 = vector.broadcast %281 : vector<1x1x32xf32> to vector<2x8x32xf32>
      %283 = arith.addf %280, %282 : vector<2x8x32xf32>
      %c0_192 = arith.constant 0 : index
      %c0_193 = arith.constant 0 : index
      %c0_194 = arith.constant 0 : index
      %284 = vector.load %arg24[%c0_192, %c0_193, %c0_194] : memref<2x8x32xf32, #tpu.memory_space<vmem>>, vector<2x8x32xf32>
      tpu.vector_store %arg24[%c0_192, %c0_193, %c0_194], %283 {strides = array<i32>} : memref<2x8x32xf32, #tpu.memory_space<vmem>>, vector<2x8x32xf32>,
    } else {
    }
    return
  }
  func.func @transform_0(%arg0: i32, %arg1: i32) -> (i32, i32, i32) {
    %c0_i32 = arith.constant 0 : i32
    %c0_i32_0 = arith.constant 0 : i32
    %c0_i32_1 = arith.constant 0 : i32
    return %arg0, %c0_i32, %c0_i32_0 : i32, i32, i32
  }
  func.func @transform_1(%arg0: i32, %arg1: i32) -> (i32, i32, i32) {
    %c0_i32 = arith.constant 0 : i32
    %c0_i32_0 = arith.constant 0 : i32
    %c0_i32_1 = arith.constant 0 : i32
    return %arg0, %c0_i32, %c0_i32_0 : i32, i32, i32
  }
  func.func @transform_2(%arg0: i32, %arg1: i32) -> (i32, i32) {
    %c0_i32 = arith.constant 0 : i32
    %c0_i32_0 = arith.constant 0 : i32
    %c0_i32_1 = arith.constant 0 : i32
    return %c0_i32, %c0_i32_0 : i32, i32
  }
  func.func @transform_3(%arg0: i32, %arg1: i32) -> (i32, i32) {
    %c0_i32 = arith.constant 0 : i32
    %c0_i32_0 = arith.constant 0 : i32
    %c0_i32_1 = arith.constant 0 : i32
    return %c0_i32, %c0_i32_0 : i32, i32
  }
  func.func @transform_4(%arg0: i32, %arg1: i32) -> (i32, i32) {
    %c0_i32 = arith.constant 0 : i32
    %c0_i32_0 = arith.constant 0 : i32
    %c0_i32_1 = arith.constant 0 : i32
    return %c0_i32, %c0_i32_0 : i32, i32
  }
  func.func @transform_5(%arg0: i32, %arg1: i32) -> (i32, i32) {
    %c0_i32 = arith.constant 0 : i32
    %c0_i32_0 = arith.constant 0 : i32
    %c0_i32_1 = arith.constant 0 : i32
    return %c0_i32, %c0_i32_0 : i32, i32
  }
  func.func @transform_6(%arg0: i32, %arg1: i32) -> (i32, i32, i32) {
    %c0_i32 = arith.constant 0 : i32
    %c0_i32_0 = arith.constant 0 : i32
    %c0_i32_1 = arith.constant 0 : i32
    return %arg1, %c0_i32, %c0_i32_0 : i32, i32, i32
  }
  func.func @transform_7(%arg0: i32, %arg1: i32) -> (i32, i32, i32) {
    %c0_i32 = arith.constant 0 : i32
    %c0_i32_0 = arith.constant 0 : i32
    %c0_i32_1 = arith.constant 0 : i32
    return %arg1, %c0_i32, %c0_i32_0 : i32, i32, i32
  }
  func.func @transform_8(%arg0: i32, %arg1: i32) -> (i32, i32, i32, i32) {
    %c0_i32 = arith.constant 0 : i32
    %c0_i32_0 = arith.constant 0 : i32
    %c0_i32_1 = arith.constant 0 : i32
    %c0_i32_2 = arith.constant 0 : i32
    return %arg1, %c0_i32, %c0_i32_0, %c0_i32_1 : i32, i32, i32, i32
  }
  func.func @transform_9(%arg0: i32, %arg1: i32) -> (i32, i32, i32, i32) {
    %c0_i32 = arith.constant 0 : i32
    %c0_i32_0 = arith.constant 0 : i32
    %c0_i32_1 = arith.constant 0 : i32
    %c0_i32_2 = arith.constant 0 : i32
    return %arg1, %c0_i32, %c0_i32_0, %c0_i32_1 : i32, i32, i32, i32
  }
  func.func @transform_10(%arg0: i32, %arg1: i32) -> (i32, i32, i32, i32) {
    %c0_i32 = arith.constant 0 : i32
    %c0_i32_0 = arith.constant 0 : i32
    %c0_i32_1 = arith.constant 0 : i32
    %c0_i32_2 = arith.constant 0 : i32
    return %arg1, %c0_i32, %c0_i32_0, %c0_i32_1 : i32, i32, i32, i32
  }
  func.func @transform_11(%arg0: i32, %arg1: i32) -> (i32, i32, i32, i32) {
    %c0_i32 = arith.constant 0 : i32
    %c0_i32_0 = arith.constant 0 : i32
    %c0_i32_1 = arith.constant 0 : i32
    %c0_i32_2 = arith.constant 0 : i32
    return %arg1, %c0_i32, %c0_i32_0, %c0_i32_1 : i32, i32, i32, i32
  }
  func.func @transform_12(%arg0: i32, %arg1: i32) -> (i32, i32, i32, i32) {
    %c0_i32 = arith.constant 0 : i32
    %c0_i32_0 = arith.constant 0 : i32
    %c0_i32_1 = arith.constant 0 : i32
    %c0_i32_2 = arith.constant 0 : i32
    return %arg1, %c0_i32, %c0_i32_0, %c0_i32_1 : i32, i32, i32, i32
  }
  func.func @transform_13(%arg0: i32, %arg1: i32) -> (i32, i32, i32, i32) {
    %c0_i32 = arith.constant 0 : i32
    %c0_i32_0 = arith.constant 0 : i32
    %c0_i32_1 = arith.constant 0 : i32
    %c0_i32_2 = arith.constant 0 : i32
    return %arg1, %c0_i32, %c0_i32_0, %c0_i32_1 : i32, i32, i32, i32
  }
  func.func @transform_14(%arg0: i32, %arg1: i32) -> (i32, i32, i32, i32) {
    %c0_i32 = arith.constant 0 : i32
    %c0_i32_0 = arith.constant 0 : i32
    %c0_i32_1 = arith.constant 0 : i32
    %c0_i32_2 = arith.constant 0 : i32
    return %arg1, %c0_i32, %c0_i32_0, %c0_i32_1 : i32, i32, i32, i32
  }
  func.func @transform_15(%arg0: i32, %arg1: i32) -> (i32, i32, i32) {
    %c0_i32 = arith.constant 0 : i32
    %c0_i32_0 = arith.constant 0 : i32
    %c0_i32_1 = arith.constant 0 : i32
    return %arg1, %c0_i32, %c0_i32_0 : i32, i32, i32
  }
  func.func @transform_16(%arg0: i32, %arg1: i32) -> (i32, i32, i32) {
    %c0_i32 = arith.constant 0 : i32
    %c0_i32_0 = arith.constant 0 : i32
    %c0_i32_1 = arith.constant 0 : i32
    return %arg1, %c0_i32, %c0_i32_0 : i32, i32, i32
  }
  func.func @transform_17(%arg0: i32, %arg1: i32) -> (i32, i32, i32) {
    %c0_i32 = arith.constant 0 : i32
    %c0_i32_0 = arith.constant 0 : i32
    %c0_i32_1 = arith.constant 0 : i32
    return %arg1, %c0_i32, %c0_i32_0 : i32, i32, i32
  }
  func.func @transform_18(%arg0: i32, %arg1: i32) -> (i32, i32, i32) {
    %c0_i32 = arith.constant 0 : i32
    %c0_i32_0 = arith.constant 0 : i32
    %c0_i32_1 = arith.constant 0 : i32
    return %arg1, %c0_i32, %c0_i32_0 : i32, i32, i32
  }
  func.func @transform_19(%arg0: i32, %arg1: i32) -> (i32, i32, i32) {
    %c0_i32 = arith.constant 0 : i32
    %c0_i32_0 = arith.constant 0 : i32
    %c0_i32_1 = arith.constant 0 : i32
    return %arg1, %c0_i32, %c0_i32_0 : i32, i32, i32
  }
  func.func @transform_20(%arg0: i32, %arg1: i32) -> (i32, i32, i32) {
    %c0_i32 = arith.constant 0 : i32
    %c0_i32_0 = arith.constant 0 : i32
    %c0_i32_1 = arith.constant 0 : i32
    return %arg1, %c0_i32, %c0_i32_0 : i32, i32, i32
  }
  func.func @transform_21(%arg0: i32, %arg1: i32) -> (i32, i32, i32) {
    %c0_i32 = arith.constant 0 : i32
    %c0_i32_0 = arith.constant 0 : i32
    %c0_i32_1 = arith.constant 0 : i32
    return %arg1, %c0_i32, %c0_i32_0 : i32, i32, i32
  }
  func.func @transform_22(%arg0: i32, %arg1: i32) -> (i32, i32, i32) {
    %c0_i32 = arith.constant 0 : i32
    %c0_i32_0 = arith.constant 0 : i32
    %c0_i32_1 = arith.constant 0 : i32
    return %arg0, %c0_i32, %c0_i32_0 : i32, i32, i32
  }
}

</mosaic_0001>

<bundles_post_ra>
// kernel: tpu_custom_call.1
= control target key start
LH: loop header
LB: loop body
LE: loop exit
PB: predicated region body
PF: predicated region fallthrough
CT: control target
= control target key end

     0   :  { %s5192_s0 = inlined_call_operand.vmem [shape: f32[4,8,32], index: 0, kind: input, shape index: {}]   ;;  %s5193_s1 = inlined_call_operand.vmem [shape: f32[4,1,8], index: 1, kind: input, shape index: {}]   ;;  %s5194_s2 = inlined_call_operand.vmem [shape: f32[1,32], index: 2, kind: input, shape index: {}]   ;;  %s5195_s3 = inlined_call_operand.vmem [shape: f32[1,32], index: 3, kind: input, shape index: {}]   ;;  %s5196_s4 = inlined_call_operand.vmem [shape: f32[1,32], index: 4, kind: input, shape index: {}]   ;;  %s5197_s5 = inlined_call_operand.vmem [shape: f32[1,32], index: 5, kind: input, shape index: {}]   ;;  %s5198_s6 = inlined_call_operand.vmem [shape: f32[2,1,32], index: 6, kind: input, shape index: {}]   ;;  %s5199_s7 = inlined_call_operand.vmem [shape: f32[2,1,32], index: 7, kind: input, shape index: {}]   ;;  %s5200_s8 = inlined_call_operand.vmem [shape: bf16[2,4,32,8], index: 8, kind: input, shape index: {}]   ;;  %s5201_s9 = inlined_call_operand.vmem [shape: f32[2,4,1,8], index: 9, kind: input, shape index: {}]   ;;  %s5202_s10 = inlined_call_operand.vmem [shape: bf16[2,4,32,8], index: 10, kind: input, shape index: {}]   ;;  %s5203_s11 = inlined_call_operand.vmem [shape: f32[2,4,1,8], index: 11, kind: input, shape index: {}]   ;;  %s5204_s12 = inlined_call_operand.vmem [shape: bf16[2,4,32,8], index: 12, kind: input, shape index: {}]   ;;  %s5205_s13 = inlined_call_operand.vmem [shape: f32[2,4,1,8], index: 13, kind: input, shape index: {}]   ;;  %s5206_s14 = inlined_call_operand.vmem [shape: bf16[2,4,8,32], index: 14, kind: input, shape index: {}]   ;;  %s5207_s15 = inlined_call_operand.vmem [shape: f32[2,1,32], index: 15, kind: input, shape index: {}]   ;;  %s5208_s16 = inlined_call_operand.vmem [shape: f32[2,1,32], index: 16, kind: input, shape index: {}]   ;;  %s5209_s17 = inlined_call_operand.vmem [shape: f32[2,1,32], index: 17, kind: input, shape index: {}]   ;;  %s5210_s18 = inlined_call_operand.vmem [shape: bf16[2,32,128], index: 18, kind: input, shape index: {}]   ;;  %s5211_s19 = inlined_call_operand.vmem [shape: f32[2,1,128], index: 19, kind: input, shape index: {}]   ;;  %s5212_s20 = inlined_call_operand.vmem [shape: bf16[2,128,32], index: 20, kind: input, shape index: {}]   ;;  %s5213_s21 = inlined_call_operand.vmem [shape: f32[2,1,32], index: 21, kind: input, shape index: {}]   ;;  %s5214_s22 = inlined_call_operand.hbm [shape: f32[4,8,32], index: 22, kind: output, shape index: {}]  }
   0x1   :  { %5234 = sst [smem:[#allocation22_spill]] %s5192_s0 }
   0x2   :  { %5235 = sst [smem:[#allocation23_spill]] %s5193_s1 }
   0x3   :  { %5236 = sst [smem:[#allocation24_spill]] %s5194_s2 }
   0x4   :  { %5237 = sst [smem:[#allocation25_spill]] %s5195_s3 }
   0x5   :  { %5238 = sst [smem:[#allocation26_spill]] %s5196_s4 }
   0x6   :  { %5239 = sst [smem:[#allocation27_spill]] %s5197_s5 }
   0x7   :  { %5240 = sst [smem:[#allocation28_spill]] %s5198_s6 }
   0x8   :  { %5241 = sst [smem:[#allocation29_spill]] %s5200_s8 }
   0x9   :  { %5242 = sst [smem:[#allocation30_spill]] %s5201_s9 }
   0xa   :  { %5243 = sst [smem:[#allocation31_spill]] %s5202_s10 }
   0xb   :  { %5244 = sst [smem:[#allocation32_spill]] %s5203_s11 }
   0xc   :  { %5245 = sst [smem:[#allocation33_spill]] %s5204_s12 }
   0xd   :  { %5246 = sst [smem:[#allocation34_spill]] %s5205_s13 }
   0xe   :  { %5247 = sst [smem:[#allocation35_spill]] %s5206_s14 }
   0xf   :  { %5248 = sst [smem:[#allocation36_spill]] %s5208_s16 }
  0x10   :  { %5249 = sst [smem:[#allocation37_spill]] %s5209_s17 }
  0x11   :  { %5250 = sst [smem:[#allocation38_spill]] %s5210_s18 }
  0x12   :  { %5251 = sst [smem:[#allocation39_spill]] %s5211_s19 }
  0x13   :  { %5252 = sst [smem:[#allocation40_spill]] %s5212_s20 }
  0x14   :  { %5253 = sst [smem:[#allocation41_spill]] %s5213_s21 }
  0x15   :  { %5254 = sst [smem:[#allocation42_spill]] %s5214_s22 }
  0x16   :  { %27 = vsyncpa [#allocation3], 0 }
  0x17   :  { %29 = vsyncpa [#allocation3 + $0x1], 0  ;;  %s4559_s3 = smov 0   ;;  %s4561_s28 = smov 0  }
  0x18   :  { %s4563_s29 = smov 0   ;;  %s4565_s30 = smov 0  }
  0x19   :  { %s4567_s4 = smov 0   ;;  %s4569_s0 = smov 0  }
  0x1a   :  { %s4571_s23 = smov 0   ;;  %s4573_s1 = smov 0  }
  0x1b LB: > { %5255 = sst [smem:[#allocation5_spill]] %s4409_s3  ;;  %s3610_s5 = sadd.s32 4294967295, %s4437_s1   ;;  %s4437_s1 = sphi %s4573_s1, %s35_s1   ;;  %s4433_s23 = sphi %s4571_s23, %s5323_s23   ;;  %s4429_s0 = sphi %s4569_s0, %s5322_s0   ;;  %s4425_s4 = sphi %s4567_s4, %s5321_s4   ;;  %s4421_s30 = sphi %s4565_s30, %s5320_s30   ;;  %s4417_s29 = sphi %s4563_s29, %s5319_s29   ;;  %s4413_s28 = sphi %s4561_s28, %s5318_s28   ;;  %s4409_s3 = sphi %s4559_s3, %s5317_s3  }
  0x1c   : > { %5256 = sst [smem:[#allocation6_spill]] %s4413_s28  ;;  %s3611_s24 = sadd.s32 4294967294, %s4437_s1  }
  0x1d   : > { %5257 = sst [smem:[#allocation7_spill]] %s4417_s29  ;;  %s44_s6 = sadd.s32 1, %s4429_s0 }
  0x1e   : > { %5258 = sst [smem:[#allocation8_spill]] %s4421_s30  ;;  %p45_p0 = scmp.ge.s32.totalorder %s44_s6, 2 }
  0x1f   : > { %5259 = sst [smem:[#allocation9_spill]] %s4425_s4  ;;  %s47_s25 = sadd.s32 1, %s4433_s23 }
  0x20   : > { %5260 = sst [smem:[#allocation10_spill]] %s4429_s0  ;;  %p616_p1 = scmp.ne.s32.totalorder %s4417_s29, %s4413_s28 }
  0x21   : > { %5261 = sst [smem:[#allocation11_spill]] %s4433_s23  ;;  %p617_p2 = scmp.eq.s32.totalorder %s3610_s5, 3 }
  0x22   : > { %5262 = sst [smem:[#allocation12_spill]] %s4437_s1  ;;  %s5325_s6 = smov (%p45_p0, %s44_s6), 0 }
  0x23   : > { %5263 = sst [smem:[#allocation13_spill]] %s5325_s6  ;;  %s5327_s25 = smov (!%p45_p0, %s47_s25), %s4433_s23 }
  0x24   : > { %p4608_p3 = por %p617_p2, %p616_p1  ;;  %p622_p4 = scmp.ne.s32.totalorder %s4413_s28, %s4409_s3 }
  0x25   : > { %p49_p5 = scmp.ge.s32.totalorder %s5327_s25, 2  ;;  %p623_p6 = scmp.eq.s32.totalorder %s3611_s24, 3 }
  0x26   : > { %s5264_s26 = scalar_select %p4608_p3, 1, 0 }
  0x27   : > { %p3614_p7 = scmp.ge.s32.totalorder %s4437_s1, 1  ;;  %p781_p8 = scmp.lt.s32.totalorder %s4437_s1, 5 }
  0x28   : > { %5265 = sst [smem:[#allocation14_spill]] %s5264_s26  ;;  %s5329_s25 = smov (%p49_p5, %s5327_s25), 0 }
  0x29   : > { %5266 = sst [smem:[#allocation15_spill]] %s5329_s25  ;;  %p4618_p9 = por %p623_p6, %p622_p4 }
  0x2a   : > { %p782_p10 = pnand %p3614_p7, %p781_p8  ;;  %s603_s27 = ssub.s32 %s4433_s23, %s5329_s25 }
  0x2b   : > { %s5267_s2 = scalar_select %p4618_p9, 1, 0 }
  0x2c   : > { %s606_s5 = sadd.s32 1, %s4417_s29  ;;  %p604_p11 = scmp.eq.s32.totalorder %s603_s27, 0 }
  0x2d   : > { %5268 = sst [smem:[#allocation16_spill]] %s5267_s2  ;;  %785 = sbr.rel (%p782_p10) target bundleno = 3081 (0xc09), region = 108 }
  0x2e   : > { %s4626_s6 = scalar_select %p604_p11, %s4417_s29, %s606_s5  }
  0x30   : > { %5269 = sst [smem:[#allocation17_spill]] %s4626_s6 }
  0x34   : > { %s5221_s24 = sand.u32 1, %s4413_s28   ;;  %s3616_s0 = sshll.u32 %s4425_s4, 1 }
  0x35   : > { %s3615_s3 = sshll.u32 %s5221_s24, 4  ;;  %p911_p12 = scmp.lt.s32.totalorder %s3616_s0, 3 }
  0x36   : > { %p921_p13 = scmp.lt.s32.totalorder %s4421_s30, 1  ;;  %s5270_s23 = sld [smem:[#allocation23_spill]] }
  0x37   : > { %s5331_s0 = smov (!%p911_p12, %s3616_s0), 3  ;;  %s5272_s1 = sld [smem:[#allocation22_spill]] }
  0x38   : > { %s4634_s2 = scalar_select %p921_p13, %s4421_s30, 1 }
  0x39   : > { %s3617_s27 = sshll.u32 %s5331_s0, 3  ;;  %s5274_s8 = sld [smem:[#allocation29_spill]] }
  0x3a   : > { %s3809_s18 = sshll.u32 %s4634_s2, 6  ;;  %s5275_s9 = sld [smem:[#allocation30_spill]] }
  0x3b   : > { %s5277_s10 = sld [smem:[#allocation31_spill]]  ;;  %s5278_s11 = sld [smem:[#allocation32_spill]] }
  0x3c   : > { %s4639_s6 = scalar_lea.vmem %s5270_s23, %s5331_s0  ;;  %s3621_s23 = sshll.u32 %s4634_s2, 2 }
  0x3d   : > { %5271 = sst [smem:[#allocation18_spill]] %s4639_s6  ;;  %s914_s22 = scalar_lea.vmem %s5272_s1, %s3617_s27 }
  0x3e   : > { %s5279_s12 = sld [smem:[#allocation33_spill]]  ;;  %s5280_s13 = sld [smem:[#allocation34_spill]] }
  0x3f   : > { %s4656_s0 = scalar_lea.vmem %s5274_s8, %s3809_s18  ;;  %s3812_s24 = sshll.u32 %s4634_s2, 4 }
  0x40   : > { %s4662_s1 = scalar_lea.vmem %s5275_s9, %s3621_s23  ;;  %s5282_s14 = sld [smem:[#allocation35_spill]] }
  0x41   : > { %5276 = sst [smem:[#allocation19_spill]] %s4662_s1  ;;  %s4667_s26 = scalar_lea.vmem %s5277_s10, %s3809_s18 }
  0x42   : > { %s4672_s27 = scalar_lea.vmem %s5278_s11, %s3621_s23  ;;  %s5285_s6 = sld [smem:[#allocation37_spill]] }
  0x43   : > { %s5288_s20 = sld [smem:[#allocation40_spill]]  ;;  %s5289_s17 = sld [smem:[#allocation41_spill]] }
  0x44   : > { %s4677_s25 = scalar_lea.vmem %s5279_s12, %s3809_s18  ;;  %s4682_s29 = scalar_lea.vmem %s5280_s13, %s3621_s23 }
  0x45   : > { %5281 = sst [smem:[#allocation20_spill]] %s4682_s29  ;;  %s5286_s13 = sld [smem:[#allocation38_spill]] }
  0x46   : > { %s4688_s4 = scalar_lea.vmem %s5282_s14, %s3812_s24  ;;  %s5287_s14 = sld [smem:[#allocation39_spill]] }
  0x47   : > { %5283 = sst [smem:[#allocation21_spill]] %s4688_s4  ;;  %s4720_s12 = scalar_lea.vmem [#allocation2], %s3615_s3 }
  0x48   : > { %s967_s19 = scalar_lea.vmem %s5285_s6, %s4634_s2  ;;  %s5290_s6 = sld [smem:[#allocation8_spill]] }
  0x49   : > { %s4714_s21 = scalar_lea.vmem %s5288_s20, %s3809_s18  ;;  %s983_s16 = scalar_lea.vmem %s5289_s17, %s4634_s2 }
  0x4b   : > { %s4705_s29 = scalar_lea.vmem %s5286_s13, %s3812_s24 }
  0x4c   : > { %s975_s4 = scalar_lea.vmem %s5287_s14, %s4634_s2 }
  0x4e   : > { %p3634_p0 = scmp.ne.s32.totalorder %s5290_s6, 0 }
  0x4f   : > { %v990_v0 = vld [vmem:[%s914_s22] sm:$0xff] (!%p3634_p0)  ;;  %vm994_vm0 = vcmask (!%p3634_p0), 261120   ;;  %v991_v1 = vld [vmem:[%s914_s22 + $0x8] sm:$0xff] (!%p3634_p0)  ;;  %s5291_s18 = sld [smem:[#allocation24_spill]] (!%p3634_p0)  ;;  %s5292_s1 = sld [smem:[#allocation25_spill]] (!%p3634_p0) }
  0x50   : > { %989 = sbr.rel (%p3634_p0) target bundleno = 398 (0x18e), region = 112  ;;  %v995_v2 = vsel (!%p3634_p0), %vm994_vm0, %v990_v0, 0.0  ;;  %v998_v3 = vsel (!%p3634_p0), %vm994_vm0, %v991_v1, 0.0 }
  0x51   : > { %996 = vadd.xlane.f32.xlu0 (!%p3634_p0), %v995_v2 }
  0x55   : > { %999 = vadd.xlane.f32.xlu0 (!%p3634_p0), %v998_v3  ;;  %v3635_v21 = vld [vmem:[%s5291_s18] ss:$0 sm:$0xff] (!%p3634_p0) }
  0x56   : > { %v3636_v23 = vld [vmem:[%s5292_s1] ss:$0 sm:$0xff] (!%p3634_p0) }
  0xde   : > { %v997_v4 = vpop.xlane.xlu0 %996 }
  0xdf   : > { %v1002_v5 = vmul.f32 0.03125, %v997_v4 }
  0xe1   : > { %v1004_v6 = vsub.f32 %v990_v0, %v1002_v5 }
  0xe2   : > { %v1000_v7 = vpop.xlane.xlu0 %999 }
  0xe3   : > { %v1003_v8 = vmul.f32 0.03125, %v1000_v7  ;;  %v1006_v9 = vmul.f32 %v1004_v6, %v1004_v6 }
  0xe5   : > { %v1005_v10 = vsub.f32 %v991_v1, %v1003_v8  ;;  %v1008_v11 = vsel %vm994_vm0, %v1006_v9, 0.0 }
  0xe6   : > { %1009 = vadd.xlane.f32.xlu1 %v1008_v11 }
  0xe7   : > { %v1007_v12 = vmul.f32 %v1005_v10, %v1005_v10 }
  0xe9   : > { %v1011_v13 = vsel %vm994_vm0, %v1007_v12, 0.0 }
  0xea   : > { %1012 = vadd.xlane.f32.xlu1 %v1011_v13 }
 0x173   : > { %v1010_v14 = vpop.xlane.xlu1 %1009 }
 0x174   : > { %v1014_v15 = vmul.f32 0.03125, %v1010_v14 }
 0x176   : > { %v1016_v16 = vadd.f32 1e-05, %v1014_v15 }
 0x177   : > { %v1013_v17 = vpop.xlane.xlu1 %1012 }
 0x178   : > { %4251 = vrsqrt.f32 %v1016_v16  ;;  %v1015_v18 = vmul.f32 0.03125, %v1013_v17 }
 0x17a   : > { %v1017_v19 = vadd.f32 1e-05, %v1015_v18 }
 0x17c   : > { %4253 = vrsqrt.f32 %v1017_v19 }
 0x182   : > { %v4252_v20 = vpop.eup %4251 }
 0x183   : > { %v1020_v22 = vmul.f32 %v4252_v20, %v1004_v6 }
 0x185   : > { %v1028_v24 = vmul.f32 %v3635_v21, %v1020_v22 }
 0x186   : > { %v4254_v25 = vpop.eup %4253 }
 0x187   : > { %v1036_v26 = vadd.f32 %v3636_v23, %v1028_v24  ;;  %v1021_v27 = vmul.f32 %v4254_v25, %v1005_v10 }
 0x189   : > { %1038 = vst.msk [vmem:[%s4720_s12] sm:$0xff] %vm994_vm0, %v1036_v26  ;;  %v1029_v28 = vmul.f32 %v3635_v21, %v1021_v27 }
 0x18b   : > { %v1037_v29 = vadd.f32 %v3636_v23, %v1029_v28 }
 0x18d   : > { %1039 = vst.msk [vmem:[%s4720_s12 + $0x8] sm:$0xff] %vm994_vm0, %v1037_v29 }
 0x18e PF: > { %vm1050_vm1 = vcmask 261120   ;;  %v4255_v44 = vld [vmem:[%s4656_s0] sm:$0xff]   ;;  %v4256_v45 = vld [vmem:[%s4656_s0 + $0x10] sm:$0xff]   ;;  %v4439_v46 = vmov 0.0   ;;  %v4257_v47 = vld [vmem:[%s4656_s0 + $0x8] sm:$0xff]   ;;  %vm4440_vm2 = vmmov 0   ;;  %s5295_s28 = scalar_lea.vmem %s5199_s7, %s4634_s2  ;;  %s5300_s10 = scalar_lea.vmem %s5207_s15, %s4634_s2 }
 0x18f   : > { %3932 = vmatprep.subr.bf16.mxu0 %v4439_v46  ;;  %3956 = vmatprep.subr.bf16.mxu1 %v4439_v46  ;;  %v4258_v48 = vld [vmem:[%s4656_s0 + $0x18] sm:$0xff]   ;;  %s5293_s5 = sld [smem:[#allocation28_spill]]  ;;  %v3638_v61 = vld [vmem:[%s5295_s28] ss:$0 sm:$0xff]  ;;  %v4260_v2 = vld [vmem:[%s4677_s25 + $0x10] sm:$0xff]   ;;  %vm1956_vm3 = vcmask 64512  }
 0x190   : > { %v1040_v30 = vld [vmem:[%s4720_s12] sm:$0xff]  ;;  %3933 = vmatpush3.bf16.msra.mxu0 %v4255_v44  ;;  %3957 = vmatpush3.bf16.msra.mxu1 %v4256_v45  ;;  %v4261_v4 = vld [vmem:[%s4667_s26 + $0x8] sm:$0xff]   ;;  %v4262_v5 = vld [vmem:[%s4677_s25 + $0x18] sm:$0xff]   ;;  %vm2444_vm4 = vcmask 1043456   ;;  %s5301_s13 = sld [smem:[#allocation36_spill]]  ;;  %s5306_s17 = sld [smem:[#allocation8_spill]] }
 0x191   : > { %v1051_v32 = vsel %vm1050_vm1, %v1040_v30, 0.0  ;;  %3934 = vmatprep.subr.bf16.mxu0 %v4439_v46  ;;  %3958 = vmatprep.subr.bf16.mxu1 %v4439_v46  ;;  %v4259_v1 = vld [vmem:[%s4667_s26] sm:$0xff]   ;;  %v4265_v8 = vld [vmem:[%s4677_s25 + $0x8] sm:$0xff]   ;;  %v4267_v10 = vld [vmem:[%s4667_s26 + $0x10] sm:$0xff]  }
 0x192   : > { %1052 = vadd.xlane.f32.xlu0 %v1051_v32  ;;  %3936 = vmatprep.mubr.msk.bf16.mxu0 %vm4440_vm2, %v4439_v46  ;;  %v4263_v6 = vld [vmem:[%s4677_s25] sm:$0xff]   ;;  %v4266_v9 = vld [vmem:[%s4667_s26 + $0x28] sm:$0xff]   ;;  %v4268_v11 = vld [vmem:[%s4656_s0 + $0x30] sm:$0xff]  }
 0x193   : > { %3960 = vmatprep.mubr.msk.bf16.mxu1 %vm4440_vm2, %v4439_v46  ;;  %v4264_v7 = vld [vmem:[%s4667_s26 + $0x20] sm:$0xff]   ;;  %v4269_v12 = vld [vmem:[%s4667_s26 + $0x18] sm:$0xff]   ;;  %v4272_v15 = vld [vmem:[%s4677_s25 + $0x30] sm:$0xff]  }
 0x194   : > { %v1041_v31 = vld [vmem:[%s4720_s12 + $0x8] sm:$0xff]  ;;  %3935 = vmatpush3.bf16.msra.mxu0 %v4257_v47  ;;  %3959 = vmatpush3.bf16.msra.mxu1 %v4258_v48  ;;  %v4271_v14 = vld [vmem:[%s4656_s0 + $0x20] sm:$0xff]   ;;  %v4277_v20 = vld [vmem:[%s4667_s26 + $0x30] sm:$0xff]  }
 0x195   : > { %v1054_v33 = vsel %vm1050_vm1, %v1041_v31, 0.0  ;;  %3940 = vmatprep.subr.bf16.mxu0 %v4439_v46  ;;  %3972 = vmatprep.subr.bf16.mxu1 %v4439_v46  ;;  %s5294_s30 = scalar_lea.vmem %s5293_s5, %s4634_s2  ;;  %v4270_v13 = vld [vmem:[%s4656_s0 + $0x38] sm:$0xff]   ;;  %v4273_v16 = vld [vmem:[%s4656_s0 + $0x28] sm:$0xff]   ;;  %v4275_v18 = vld [vmem:[%s4677_s25 + $0x20] sm:$0xff]   ;;  %s5296_s0 = sld [smem:[#allocation19_spill]] }
 0x196   : > { %1055 = vadd.xlane.f32.xlu0 %v1054_v33  ;;  %v3637_v57 = vld [vmem:[%s5294_s30] ss:$0 sm:$0xff]  ;;  %v4274_v17 = vld [vmem:[%s4677_s25 + $0x38] sm:$0xff]   ;;  %v4276_v19 = vld [vmem:[%s4677_s25 + $0x28] sm:$0xff]   ;;  %s5299_s25 = sld [smem:[#allocation21_spill]]  ;;  %s5302_s14 = scalar_lea.vmem %s5301_s13, %s4634_s2 }
 0x197   : > { %v4278_v21 = vld [vmem:[%s4667_s26 + $0x38] sm:$0xff]   ;;  %s5297_s26 = sld [smem:[#allocation20_spill]]  ;;  %p3801_p1 = scmp.ne.s32.totalorder %s5306_s17, 1 }
 0x198   : > { %s5307_s5 = sld [smem:[#allocation26_spill]] (!%p3801_p1)  ;;  %s5308_s8 = sld [smem:[#allocation27_spill]] (!%p3801_p1) }
 0x21f   : > { %v1053_v34 = vpop.xlane.xlu0 %1052 }
 0x220   : > { %v1058_v35 = vmul.f32 0.03125, %v1053_v34 }
 0x222   : > { %v1060_v36 = vsub.f32 %v1040_v30, %v1058_v35  ;;  %v3643_v30 = vld [vmem:[%s4672_s27] ss:$0 sm:$0xff] }
 0x223   : > { %v1056_v37 = vpop.xlane.xlu0 %1055 }
 0x224   : > { %v1059_v38 = vmul.f32 0.03125, %v1056_v37  ;;  %v1062_v39 = vmul.f32 %v1060_v36, %v1060_v36 }
 0x226   : > { %v1061_v40 = vsub.f32 %v1041_v31, %v1059_v38  ;;  %v1064_v41 = vsel %vm1050_vm1, %v1062_v39, 0.0 }
 0x227   : > { %1065 = vadd.xlane.f32.xlu1 %v1064_v41 }
 0x228   : > { %v1063_v42 = vmul.f32 %v1061_v40, %v1061_v40 }
 0x22a   : > { %v1067_v43 = vsel %vm1050_vm1, %v1063_v42, 0.0  ;;  %v3639_v42 = vld [vmem:[%s5296_s0] ss:$0 sm:$0xff] }
 0x22b   : > { %1068 = vadd.xlane.f32.xlu1 %v1067_v43 }
 0x2b4   : > { %v1066_v49 = vpop.xlane.xlu1 %1065 }
 0x2b5   : > { %v1070_v50 = vmul.f32 0.03125, %v1066_v49 }
 0x2b7   : > { %v1072_v51 = vadd.f32 1e-05, %v1070_v50 }
 0x2b8   : > { %v1069_v52 = vpop.xlane.xlu1 %1068 }
 0x2b9   : > { %4289 = vrsqrt.f32 %v1072_v51  ;;  %v1071_v53 = vmul.f32 0.03125, %v1069_v52 }
 0x2bb   : > { %v1073_v54 = vadd.f32 1e-05, %v1071_v53 }
 0x2bd   : > { %4291 = vrsqrt.f32 %v1073_v54 }
 0x2c3   : > { %v4290_v55 = vpop.eup %4289 }
 0x2c4   : > { %v1076_v56 = vmul.f32 %v4290_v55, %v1060_v36 }
 0x2c6   : > { %v1084_v59 = vmul.f32 %v3637_v57, %v1076_v56 }
 0x2c7   : > { %v4292_v58 = vpop.eup %4291 }
 0x2c8   : > { %v1077_v60 = vmul.f32 %v4292_v58, %v1061_v40  ;;  %v1092_v63 = vadd.f32 %v3638_v61, %v1084_v59  ;;  %v3665_v59 = vld [vmem:[%s4672_s27 + $0x1] ss:$0 sm:$0xff] }
 0x2ca   : > { %v1085_v62 = vmul.f32 %v3637_v57, %v1077_v60 }
 0x2cc   : > { %v1093_v0 = vadd.f32 %v3638_v61, %v1085_v62 }
 0x2ce   : > { %v4769_v3 = vpack.c.bf16 %v1093_v0, %v1092_v63 }
 0x2d0   : > { %3937 = vmatmul.mubr.msk.bf16.vlgmr.msra.gmra.mrb[0].mxu0 %vm1050_vm1, %v4769_v3  ;;  %3961 = vmatmul.mubr.msk.bf16.vlgmr.msra.gmra.mrb[0].mxu1 %vm1050_vm1, %v4769_v3 }
 0x2d1   : > { %3941 = vmatpush3.bf16.msra.mxu0 %v4259_v1  ;;  %3973 = vmatpush3.bf16.msra.mxu1 %v4260_v2  ;;  %v3692_v1 = vld [vmem:[%s4672_s27 + $0x2] ss:$0 sm:$0xff] }
 0x2d2   : > { %3942 = vmatprep.subr.bf16.mxu0 %v4439_v46  ;;  %3974 = vmatprep.subr.bf16.mxu1 %v4439_v46 }
 0x2d3   : > { %3944 = vmatprep.mubr.msk.bf16.mxu0 %vm4440_vm2, %v4439_v46  ;;  %3976 = vmatprep.mubr.msk.bf16.mxu1 %vm4440_vm2, %v4439_v46 }
 0x2d5   : > { %3943 = vmatpush3.bf16.msra.mxu0 %v4261_v4  ;;  %3975 = vmatpush3.bf16.msra.mxu1 %v4262_v5 }
 0x2d6   : > { %3948 = vmatprep.subr.bf16.mxu0 %v4439_v46  ;;  %3988 = vmatprep.subr.bf16.mxu1 %v4439_v46 }
 0x2d8   : > { %3945 = vmatmul.mubr.msk.bf16.vlgmr.msra.gmra.mrb[4].mxu0 %vm1050_vm1, %v4769_v3  ;;  %3977 = vmatmul.mubr.msk.bf16.vlgmr.msra.gmra.mrb[4].mxu1 %vm1050_vm1, %v4769_v3 }
 0x2d9   : > { %3949 = vmatpush3.bf16.msra.mxu0 %v4263_v6  ;;  %3989 = vmatpush3.bf16.msra.mxu1 %v4264_v7 }
 0x2da   : > { %3950 = vmatprep.subr.bf16.mxu0 %v4439_v46  ;;  %3990 = vmatprep.subr.bf16.mxu1 %v4439_v46 }
 0x2db   : > { %3952 = vmatprep.mubr.msk.bf16.mxu0 %vm4440_vm2, %v4439_v46  ;;  %3992 = vmatprep.mubr.msk.bf16.mxu1 %vm4440_vm2, %v4439_v46 }
 0x2dd   : > { %3951 = vmatpush3.bf16.msra.mxu0 %v4265_v8  ;;  %3991 = vmatpush3.bf16.msra.mxu1 %v4266_v9  ;;  %v3656_v8 = vld [vmem:[%s5296_s0 + $0x1] ss:$0 sm:$0xff] }
 0x2de   : > { %3964 = vmatprep.subr.bf16.mxu0 %v4439_v46  ;;  %4004 = vmatprep.subr.bf16.mxu1 %v4439_v46 }
 0x2e0   : > { %3953 = vmatmul.mubr.msk.bf16.vlgmr.msra.gmra.mrb[8].mxu0 %vm1050_vm1, %v4769_v3  ;;  %3993 = vmatmul.mubr.msk.bf16.vlgmr.msra.gmra.mrb[8].mxu1 %vm1050_vm1, %v4769_v3 }
 0x2e1   : > { %3965 = vmatpush3.bf16.msra.mxu0 %v4267_v10  ;;  %4005 = vmatpush3.bf16.msra.mxu1 %v4268_v11 }
 0x2e2   : > { %3966 = vmatprep.subr.bf16.mxu0 %v4439_v46  ;;  %4006 = vmatprep.subr.bf16.mxu1 %v4439_v46 }
 0x2e3   : > { %3968 = vmatprep.mubr.msk.bf16.mxu0 %vm4440_vm2, %v4439_v46  ;;  %4008 = vmatprep.mubr.msk.bf16.mxu1 %vm4440_vm2, %v4439_v46 }
 0x2e5   : > { %3967 = vmatpush3.bf16.msra.mxu0 %v4269_v12  ;;  %4007 = vmatpush3.bf16.msra.mxu1 %v4270_v13 }
 0x2e6   : > { %3980 = vmatprep.subr.bf16.mxu0 %v4439_v46  ;;  %4020 = vmatprep.subr.bf16.mxu1 %v4439_v46 }
 0x2e8   : > { %3969 = vmatmul.mubr.msk.bf16.vlgmr.msra.gmra.mrb[12].mxu0 %vm1050_vm1, %v4769_v3  ;;  %4009 = vmatmul.mubr.msk.bf16.vlgmr.msra.gmra.mrb[12].mxu1 %vm1050_vm1, %v4769_v3 }
 0x2e9   : > { %3981 = vmatpush3.bf16.msra.mxu0 %v4271_v14  ;;  %4021 = vmatpush3.bf16.msra.mxu1 %v4272_v15 }
 0x2ea   : > { %3982 = vmatprep.subr.bf16.mxu0 %v4439_v46  ;;  %4022 = vmatprep.subr.bf16.mxu1 %v4439_v46 }
 0x2eb   : > { %3984 = vmatprep.mubr.msk.bf16.mxu0 %vm4440_vm2, %v4439_v46  ;;  %4024 = vmatprep.mubr.msk.bf16.mxu1 %vm4440_vm2, %v4439_v46 }
 0x2ed   : > { %3983 = vmatpush3.bf16.msra.mxu0 %v4273_v16  ;;  %4023 = vmatpush3.bf16.msra.mxu1 %v4274_v17 }
 0x2ee   : > { %3996 = vmatprep.subr.bf16.mxu0 %v4439_v46  ;;  %4034 = vmatprep.subr.bf16.mxu1 %v4439_v46 }
 0x2f0   : > { %3985 = vmatmul.mubr.msk.bf16.vlgmr.msra.gmra.mrb[16].mxu0 %vm1050_vm1, %v4769_v3  ;;  %4025 = vmatmul.mubr.msk.bf16.vlgmr.msra.gmra.mrb[16].mxu1 %vm1050_vm1, %v4769_v3 }
 0x2f1   : > { %3997 = vmatpush3.bf16.msra.mxu0 %v4275_v18  ;;  %4000 = vmatprep.mubr.msk.bf16.mxu0 %vm4440_vm2, %v4439_v46 }
 0x2f2   : > { %3998 = vmatprep.subr.bf16.mxu0 %v4439_v46  ;;  %4036 = vmatprep.mubr.msk.bf16.mxu1 %vm4440_vm2, %v4439_v46 }
 0x2f5   : > { %3999 = vmatpush3.bf16.msra.mxu0 %v4276_v19 }
 0x2f6   : > { %4012 = vmatprep.subr.bf16.mxu0 %v4439_v46 }
 0x2f8   : > { %4001 = vmatmul.mubr.msk.bf16.vlgmr.msra.gmra.mrb[20].mxu0 %vm1050_vm1, %v4769_v3 }
 0x2f9   : > { %4013 = vmatpush3.bf16.msra.mxu0 %v4277_v20  ;;  %4016 = vmatprep.mubr.msk.bf16.mxu0 %vm4440_vm2, %v4439_v46 }
 0x2fa   : > { %4014 = vmatprep.subr.bf16.mxu0 %v4439_v46 }
 0x2fd   : > { %4015 = vmatpush3.bf16.msra.mxu0 %v4278_v21 }
 0x2fe   : > { %4028 = vmatprep.subr.bf16.mxu0 %v4439_v46 }
 0x300   : > { %4017 = vmatmul.mubr.msk.bf16.vlgmr.msra.gmra.mrb[24].mxu0 %vm1050_vm1, %v4769_v3 }
 0x301   : > { %4030 = vmatprep.mubr.msk.bf16.mxu0 %vm4440_vm2, %v4439_v46 }
 0x3a3   : > { %v1155_v22 = vpop.f32.mrb[0].mxu0  ;;  %v1352_v23 = vpop.f32.mrb[0].mxu1 }
 0x3a4   : > { %v3938_v24 = vpop.f32.mrb[1].mxu0  ;;  %v3962_v25 = vpop.f32.mrb[1].mxu1  ;;  %v1156_v45 = vadd.f32 %v3639_v42, %v1155_v22  ;;  %v1353_v12 = vadd.f32 %v3656_v8, %v1352_v23 }
 0x3a5   : > { %v1158_v26 = vpop.f32.mrb[2].mxu0  ;;  %v4857_v27 = vpop.f32.mrb[2].mxu1 }
 0x3a6   : > { %v3939_v28 = vpop.f32.mrb[3].mxu0  ;;  %v3963_v29 = vpop.f32.mrb[3].mxu1  ;;  %v1159_v50 = vadd.f32 %v3639_v42, %v1158_v26  ;;  %v3815_v55 = vpack.c.bf16 %v1156_v45, %v1156_v45  ;;  %v1356_v17 = vadd.f32 %v3656_v8, %v4857_v27  ;;  %v3817_v23 = vpack.c.bf16 %v1353_v12, %v1353_v12  ;;  %v3647_v45 = vld [vmem:[%s5297_s26] ss:$0 sm:$0xff] }
 0x3a7   : > { %v3683_v28 = vld [vmem:[%s5296_s0 + $0x2] ss:$0 sm:$0xff] }
 0x3a8   : > { %v3816_v58 = vpack.c.bf16 %v1159_v50, %v1159_v50  ;;  %v3818_v29 = vpack.c.bf16 %v1356_v17, %v1356_v17 }
 0x3ab   : > { %v1220_v31 = vpop.f32.mrb[4].mxu0  ;;  %v4860_v32 = vpop.f32.mrb[4].mxu1 }
 0x3ac   : > { %v1221_v33 = vadd.f32 %v3643_v30, %v1220_v31  ;;  %v3946_v34 = vpop.f32.mrb[5].mxu0  ;;  %v3978_v35 = vpop.f32.mrb[5].mxu1 }
 0x3ad   : > { %v1223_v36 = vpop.f32.mrb[6].mxu0  ;;  %v4862_v37 = vpop.f32.mrb[6].mxu1 }
 0x3ae   : > { %v3823_v38 = vpack.c.bf16 %v1221_v33, %v1221_v33  ;;  %v1224_v39 = vadd.f32 %v3643_v30, %v1223_v36  ;;  %v3947_v40 = vpop.f32.mrb[7].mxu0  ;;  %v3979_v41 = vpop.f32.mrb[7].mxu1 }
 0x3af   : > { %v3719_v41 = vld [vmem:[%s4672_s27 + $0x3] ss:$0 sm:$0xff]  ;;  %s5298_s27 = sld [smem:[#allocation18_spill]] }
 0x3b0   : > { %v1961_v43 = vsel %vm1956_vm3, %v3823_v38, 0  ;;  %v3824_v44 = vpack.c.bf16 %v1224_v39, %v1224_v39 }
 0x3b1   : > { %4029 = vmatpush3.bf16.xpose.msra.mxu0 %v1961_v43 }
 0x3b2   : > { %v2007_v47 = vsel %vm1956_vm3, %v3824_v44, 0  ;;  %4040 = vmatprep.subr.bf16.mxu0 %v4439_v46 }
 0x3b3   : > { %v4868_v48 = vpop.f32.mrb[8].mxu0  ;;  %v1620_v49 = vpop.f32.mrb[8].mxu1  ;;  %4035 = vmatpush3.bf16.xpose.msra.mxu1 %v2007_v47 }
 0x3b4   : > { %v3954_v51 = vpop.f32.mrb[9].mxu0  ;;  %v3994_v52 = vpop.f32.mrb[9].mxu1  ;;  %4046 = vmatprep.subr.bf16.mxu1 %v4439_v46  ;;  %v1621_v9 = vadd.f32 %v3692_v1, %v1620_v49 }
 0x3b5   : > { %v4871_v53 = vpop.f32.mrb[10].mxu0  ;;  %v1623_v54 = vpop.f32.mrb[10].mxu1  ;;  %v3710_v52 = vld [vmem:[%s5296_s0 + $0x3] ss:$0 sm:$0xff] }
 0x3b6   : > { %v3955_v56 = vpop.f32.mrb[11].mxu0  ;;  %v3995_v57 = vpop.f32.mrb[11].mxu1  ;;  %v1624_v13 = vadd.f32 %v3692_v1, %v1623_v54  ;;  %v3827_v18 = vpack.c.bf16 %v1621_v9, %v1621_v9  ;;  %v1286_v54 = vadd.f32 %v3647_v45, %v4868_v48  ;;  %v2327_v1 = vlaneseq }
 0x3b7   : > { %v1289_v57 = vadd.f32 %v3647_v45, %v4871_v53 }
 0x3b8   : > { %4031 = vmatmul.mubr.msk.bf16.vlgmr.msra.gmra.mrb[28].mxu0 %vm1956_vm3, %v3815_v55  ;;  %v3828_v24 = vpack.c.bf16 %v1624_v13, %v1624_v13  ;;  %v2145_v30 = vsel %vm1956_vm3, %v3827_v18, 0 }
 0x3b9   : > { %4042 = vmatprep.mubr.msk.bf16.mxu0 %vm4440_vm2, %v4439_v46  ;;  %v3832_v48 = vpack.c.bf16 %v1289_v57, %v1289_v57 }
 0x3ba   : > { %4037 = vmatmul.mubr.msk.bf16.vlgmr.msra.gmra.mrb[20].mxu1 %vm1956_vm3, %v3816_v58  ;;  %v2191_v27 = vsel %vm1956_vm3, %v3828_v24, 0 }
 0x3bb   : > { %v1419_v60 = vpop.f32.mrb[12].mxu0  ;;  %v4878_v61 = vpop.f32.mrb[12].mxu1  ;;  %4048 = vmatprep.mubr.msk.bf16.mxu1 %vm4440_vm2, %v4439_v46 }
 0x3bc   : > { %v1420_v62 = vadd.f32 %v3665_v59, %v1419_v60  ;;  %v3970_v63 = vpop.f32.mrb[13].mxu0  ;;  %v4010_v0 = vpop.f32.mrb[13].mxu1  ;;  %v1755_v58 = vadd.f32 %v3710_v52, %v4878_v61  ;;  %v3831_v60 = vpack.c.bf16 %v1286_v54, %v1286_v54  ;;  %v2492_v61 = vsel %vm2444_vm4, %v3832_v48, 0 }
 0x3bd   : > { %v1422_v2 = vpop.f32.mrb[14].mxu0  ;;  %v4883_v3 = vpop.f32.mrb[14].mxu1 }
 0x3be   : > { %v3825_v4 = vpack.c.bf16 %v1420_v62, %v1420_v62  ;;  %v1423_v5 = vadd.f32 %v3665_v59, %v1422_v2  ;;  %v3971_v6 = vpop.f32.mrb[15].mxu0  ;;  %v4011_v7 = vpop.f32.mrb[15].mxu1  ;;  %v1758_v62 = vadd.f32 %v3710_v52, %v4883_v3  ;;  %v3821_v63 = vpack.c.bf16 %v1755_v58, %v1755_v58  ;;  %v1042_v2 = vld [vmem:[%s5298_s27] sm:$0x1] }
 0x3bf   : > { %v2446_v0 = vsel %vm2444_vm4, %v3831_v60, 0  ;;  %v2328_v3 = vshrl.u32 %v2327_v1, 7  ;;  %vm1044_vm5 = vcmp.gt.f32.partialorder %v1042_v2, 0.5 }
 0x3c0   : > { %v2053_v10 = vsel %vm1956_vm3, %v3825_v4, 0  ;;  %v3826_v11 = vpack.c.bf16 %v1423_v5, %v1423_v5  ;;  %v3822_v53 = vpack.c.bf16 %v1758_v62, %v1758_v62  ;;  %v1043_v4 = vld [vmem:[%s5298_s27 + $0x1] sm:$0x1]  ;;  %v1046_v6 = vsel %vm1044_vm5, -1e+30, %v4439_v46 }
 0x3c1   : > { %4041 = vmatpush3.bf16.xpose.msra.mxu0 %v2053_v10  ;;  %v2329_v5 = vsub.s32 0, %v2328_v3  ;;  %vm1045_vm6 = vcmp.gt.f32.partialorder %v1043_v4, 0.5 }
 0x3c2   : > { %v2099_v14 = vsel %vm1956_vm3, %v3826_v11, 0  ;;  %4052 = vmatprep.subr.bf16.mxu0 %v4439_v46  ;;  %v1047_v7 = vsel %vm1045_vm6, -1e+30, %v4439_v46 }
 0x3c3   : > { %v1553_v15 = vpop.f32.mrb[16].mxu0  ;;  %v4889_v16 = vpop.f32.mrb[16].mxu1  ;;  %4047 = vmatpush3.bf16.xpose.msra.mxu1 %v2099_v14  ;;  %v2330_v8 = vrot.slane %v1046_v6, %v2329_v5  ;;  %v2334_v9 = vrot.slane %v1047_v7, %v2329_v5 }
 0x3c4   : > { %v3986_v19 = vpop.f32.mrb[17].mxu0  ;;  %v4026_v20 = vpop.f32.mrb[17].mxu1  ;;  %4058 = vmatprep.subr.bf16.mxu1 %v4439_v46  ;;  %v1554_v31 = vadd.f32 %v3683_v28, %v1553_v15 }
 0x3c5   : > { %v1556_v21 = vpop.f32.mrb[18].mxu0  ;;  %v4893_v22 = vpop.f32.mrb[18].mxu1 }
 0x3c6   : > { %v3987_v25 = vpop.f32.mrb[19].mxu0  ;;  %v4027_v26 = vpop.f32.mrb[19].mxu1  ;;  %v1557_v34 = vadd.f32 %v3683_v28, %v1556_v21  ;;  %v3819_v38 = vpack.c.bf16 %v1554_v31, %v1554_v31 }
 0x3c8   : > { %4043 = vmatmul.mubr.msk.bf16.vlgmr.msra.gmra.mrb[32].mxu0 %vm1956_vm3, %v3817_v23  ;;  %v3820_v40 = vpack.c.bf16 %v1557_v34, %v1557_v34 }
 0x3c9   : > { %4053 = vmatpush3.bf16.xpose.msra.mxu0 %v2145_v30  ;;  %4054 = vmatprep.mubr.msk.bf16.mxu0 %vm4440_vm2, %v4439_v46 }
 0x3ca   : > { %4049 = vmatmul.mubr.msk.bf16.vlgmr.msra.gmra.mrb[24].mxu1 %vm1956_vm3, %v3818_v29  ;;  %4064 = vmatprep.subr.bf16.mxu0 %v4439_v46 }
 0x3cb   : > { %v4903_v33 = vpop.f32.mrb[20].mxu0  ;;  %4059 = vmatpush3.bf16.xpose.msra.mxu1 %v2191_v27  ;;  %4060 = vmatprep.mubr.msk.bf16.mxu1 %vm4440_vm2, %v4439_v46 }
 0x3cc   : > { %v4002_v35 = vpop.f32.mrb[21].mxu0  ;;  %4070 = vmatprep.subr.bf16.mxu1 %v4439_v46 }
 0x3cd   : > { %v4908_v36 = vpop.f32.mrb[22].mxu0 }
 0x3ce   : > { %v4003_v39 = vpop.f32.mrb[23].mxu0 }
 0x3d0   : > { %4055 = vmatmul.mubr.msk.bf16.vlgmr.msra.gmra.mrb[36].mxu0 %vm1956_vm3, %v3819_v38 }
 0x3d1   : > { %4066 = vmatprep.mubr.msk.bf16.mxu0 %vm4440_vm2, %v4439_v46 }
 0x3d2   : > { %4061 = vmatmul.mubr.msk.bf16.vlgmr.msra.gmra.mrb[28].mxu1 %vm1956_vm3, %v3820_v40 }
 0x3d3   : > { %v1821_v42 = vpop.f32.mrb[24].mxu0  ;;  %4072 = vmatprep.mubr.msk.bf16.mxu1 %vm4440_vm2, %v4439_v46 }
 0x3d4   : > { %v1822_v43 = vadd.f32 %v3719_v41, %v1821_v42  ;;  %v4018_v44 = vpop.f32.mrb[25].mxu0 }
 0x3d5   : > { %v1824_v47 = vpop.f32.mrb[26].mxu0 }
 0x3d6   : > { %v3829_v49 = vpack.c.bf16 %v1822_v43, %v1822_v43  ;;  %v1825_v50 = vadd.f32 %v3719_v41, %v1824_v47  ;;  %v4019_v51 = vpop.f32.mrb[27].mxu0 }
 0x3d8   : > { %v2237_v55 = vsel %vm1956_vm3, %v3829_v49, 0  ;;  %v3830_v56 = vpack.c.bf16 %v1825_v50, %v1825_v50 }
 0x3d9   : > { %4065 = vmatpush3.bf16.xpose.msra.mxu0 %v2237_v55 }
 0x3da   : > { %v2283_v59 = vsel %vm1956_vm3, %v3830_v56, 0  ;;  %4076 = vmatprep.subr.bf16.mxu0 %v4439_v46 }
 0x3db   : > { %4071 = vmatpush3.bf16.xpose.msra.mxu1 %v2283_v59 }
 0x3dc   : > { %4082 = vmatprep.subr.bf16.mxu1 %v4439_v46 }
 0x3e0   : > { %4067 = vmatmul.mubr.msk.bf16.vlgmr.msra.gmra.mrb[40].mxu0 %vm1956_vm3, %v3821_v63 }
 0x3e1   : > { %4077 = vmatpush3.bf16.msra.mxu0 %v2446_v0  ;;  %4078 = vmatprep.mubr.msk.bf16.mxu0 %vm4440_vm2, %v4439_v46 }
 0x3e2   : > { %4073 = vmatmul.mubr.msk.bf16.vlgmr.msra.gmra.mrb[32].mxu1 %vm1956_vm3, %v3822_v53  ;;  %4088 = vmatprep.subr.bf16.mxu0 %v4439_v46 }
 0x3e3   : > { %4083 = vmatpush3.bf16.msra.mxu1 %v2492_v61  ;;  %4084 = vmatprep.mubr.msk.bf16.mxu1 %vm4440_vm2, %v4439_v46 }
 0x3e4   : > { %4094 = vmatprep.subr.bf16.mxu1 %v4439_v46 }
 0x48b   : > { %v1997_v10 = vpop.f32.mrb[28].mxu0 }
 0x48c   : > { %v2337_v11 = vadd.f32 %v2330_v8, %v1997_v10  ;;  %v4032_v12 = vpop.f32.mrb[29].mxu0 }
 0x48d   : > { %v2000_v13 = vpop.f32.mrb[30].mxu0  ;;  %v2043_v14 = vpop.f32.mrb[20].mxu1 }
 0x48e   : > { %v2338_v15 = vadd.f32 %v2334_v9, %v2043_v14  ;;  %v4033_v17 = vpop.f32.mrb[31].mxu0  ;;  %v4038_v18 = vpop.f32.mrb[21].mxu1  ;;  %v2345_v19 = vsel %vm1956_vm3, %v2337_v11, -inf }
 0x48f   : > { %v2046_v20 = vpop.f32.mrb[22].mxu1  ;;  %2346 = vmax.xlane.f32.xlu0 %v2345_v19 }
 0x490   : > { %v4039_v21 = vpop.f32.mrb[23].mxu1  ;;  %v2348_v23 = vsel %vm1956_vm3, %v2338_v15, -inf }
 0x491   : > { %2349 = vmax.xlane.f32.xlu1 %v2348_v23 }
 0x49b   : > { %v2089_v24 = vpop.f32.mrb[32].mxu0 }
 0x49c   : > { %v2339_v25 = vadd.f32 %v2330_v8, %v2089_v24  ;;  %v4044_v26 = vpop.f32.mrb[33].mxu0 }
 0x49d   : > { %v2092_v28 = vpop.f32.mrb[34].mxu0  ;;  %v2135_v29 = vpop.f32.mrb[24].mxu1 }
 0x49e   : > { %v2340_v30 = vadd.f32 %v2334_v9, %v2135_v29  ;;  %v4045_v27 = vpop.f32.mrb[35].mxu0  ;;  %v4050_v31 = vpop.f32.mrb[25].mxu1  ;;  %v2351_v34 = vsel %vm1956_vm3, %v2339_v25, -inf }
 0x49f   : > { %v2138_v35 = vpop.f32.mrb[26].mxu1  ;;  %2352 = vmax.xlane.f32.xlu0 %v2351_v34 }
 0x4a0   : > { %v4051_v38 = vpop.f32.mrb[27].mxu1  ;;  %v2354_v39 = vsel %vm1956_vm3, %v2340_v30, -inf }
 0x4a1   : > { %2355 = vmax.xlane.f32.xlu1 %v2354_v39 }
 0x4a3   : > { %v2181_v40 = vpop.f32.mrb[36].mxu0 }
 0x4a4   : > { %v2341_v41 = vadd.f32 %v2330_v8, %v2181_v40  ;;  %v4056_v42 = vpop.f32.mrb[37].mxu0 }
 0x4a5   : > { %v2184_v43 = vpop.f32.mrb[38].mxu0  ;;  %v2227_v44 = vpop.f32.mrb[28].mxu1 }
 0x4a6   : > { %v2342_v45 = vadd.f32 %v2334_v9, %v2227_v44  ;;  %v4057_v47 = vpop.f32.mrb[39].mxu0  ;;  %v4062_v49 = vpop.f32.mrb[29].mxu1  ;;  %v2357_v50 = vsel %vm1956_vm3, %v2341_v41, -inf }
 0x4a7   : > { %v2230_v51 = vpop.f32.mrb[30].mxu1  ;;  %2358 = vmax.xlane.f32.xlu0 %v2357_v50 }
 0x4a8   : > { %v4063_v52 = vpop.f32.mrb[31].mxu1  ;;  %v2360_v54 = vsel %vm1956_vm3, %v2342_v45, -inf  ;;  %v3674_v51 = vld [vmem:[%s5297_s26 + $0x1] ss:$0 sm:$0xff] }
 0x4a9   : > { %2361 = vmax.xlane.f32.xlu1 %v2360_v54  ;;  %v1487_v52 = vadd.f32 %v3674_v51, %v4860_v32  ;;  %v1490_v54 = vadd.f32 %v3674_v51, %v4862_v37 }
 0x4b3   : > { %v2273_v55 = vpop.f32.mrb[40].mxu0 }
 0x4b4   : > { %v2343_v56 = vadd.f32 %v2330_v8, %v2273_v55  ;;  %v4068_v57 = vpop.f32.mrb[41].mxu0 }
 0x4b5   : > { %v2276_v58 = vpop.f32.mrb[42].mxu0  ;;  %v2319_v59 = vpop.f32.mrb[32].mxu1 }
 0x4b6   : > { %v2344_v60 = vadd.f32 %v2334_v9, %v2319_v59  ;;  %v4069_v62 = vpop.f32.mrb[43].mxu0  ;;  %v4074_v48 = vpop.f32.mrb[33].mxu1  ;;  %v2363_v63 = vsel %vm1956_vm3, %v2343_v56, -inf  ;;  %v3834_v59 = vpack.c.bf16 %v1490_v54, %v1490_v54 }
 0x4b7   : > { %v2322_v0 = vpop.f32.mrb[34].mxu1  ;;  %2364 = vmax.xlane.f32.xlu0 %v2363_v63 }
 0x4b8   : > { %v4075_v53 = vpop.f32.mrb[35].mxu1  ;;  %v2366_v61 = vsel %vm1956_vm3, %v2344_v60, -inf  ;;  %v2584_v32 = vsel %vm2444_vm4, %v3834_v59, 0 }
 0x4b9   : > { %2367 = vmax.xlane.f32.xlu1 %v2366_v61  ;;  %v3701_v53 = vld [vmem:[%s5297_s26 + $0x2] ss:$0 sm:$0xff] }
 0x4ba   : > { %v1688_v61 = vadd.f32 %v3701_v53, %v4903_v33 }
 0x51c   : > { %v2347_v1 = vpop.xlane.xlu0 %2346 }
 0x51d   : > { %v2369_v2 = vsub.f32 %v2337_v11, %v2347_v1 }
 0x51e   : > { %v2350_v3 = vpop.xlane.xlu1 %2349 }
 0x51f   : > { %v2377_v4 = vmul.f32 1.442695, %v2369_v2  ;;  %v2370_v5 = vsub.f32 %v2338_v15, %v2350_v3  ;;  %v1691_v2 = vadd.f32 %v3701_v53, %v4908_v36 }
 0x521   : > { %4293 = vpow2.f32 %v2377_v4  ;;  %v2379_v6 = vmul.f32 1.442695, %v2370_v5  ;;  %v3835_v5 = vpack.c.bf16 %v1688_v61, %v1688_v61 }
 0x523   : > { %4295 = vpow2.f32 %v2379_v6  ;;  %v2630_v33 = vsel %vm2444_vm4, %v3835_v5, 0 }
 0x52b   : > { %v4294_v7 = vpop.eup %4293 }
 0x52c   : > { %v2353_v8 = vpop.xlane.xlu0 %2352  ;;  %v2393_v9 = vsel %vm1956_vm3, %v4294_v7, 0.0 }
 0x52d   : > { %v4296_v10 = vpop.eup %4295  ;;  %v2371_v12 = vsub.f32 %v2339_v25, %v2353_v8  ;;  %2394 = vadd.xlane.f32.xlu0 %v2393_v9  ;;  %v3728_v8 = vld [vmem:[%s5297_s26 + $0x3] ss:$0 sm:$0xff]  ;;  %v3836_v9 = vpack.c.bf16 %v1691_v2, %v1691_v2 }
 0x52e   : > { %v2356_v13 = vpop.xlane.xlu1 %2355  ;;  %v2396_v14 = vsel %vm1956_vm3, %v4296_v10, 0.0  ;;  %v1892_v36 = vadd.f32 %v3728_v8, %v4893_v22 }
 0x52f   : > { %v2381_v17 = vmul.f32 1.442695, %v2371_v12  ;;  %v2372_v18 = vsub.f32 %v2340_v30, %v2356_v13  ;;  %2397 = vadd.xlane.f32.xlu1 %v2396_v14  ;;  %v1889_v13 = vadd.f32 %v3728_v8, %v4889_v16 }
 0x531   : > { %4297 = vpow2.f32 %v2381_v17  ;;  %v2383_v11 = vmul.f32 1.442695, %v2372_v18  ;;  %v2676_v17 = vsel %vm2444_vm4, %v3836_v9, 0  ;;  %v3837_v16 = vpack.c.bf16 %v1889_v13, %v1889_v13 }
 0x533   : > { %4299 = vpow2.f32 %v2383_v11 }
 0x534   : > { %v2359_v15 = vpop.xlane.xlu0 %2358 }
 0x535   : > { %v2373_v19 = vsub.f32 %v2341_v41, %v2359_v15 }
 0x536   : > { %v2362_v20 = vpop.xlane.xlu1 %2361 }
 0x537   : > { %v2385_v21 = vmul.f32 1.442695, %v2373_v19  ;;  %v2374_v23 = vsub.f32 %v2342_v45, %v2362_v20  ;;  %v3838_v19 = vpack.c.bf16 %v1892_v36, %v1892_v36 }
 0x539   : > { %4301 = vpow2.f32 %v2385_v21  ;;  %v2387_v24 = vmul.f32 1.442695, %v2374_v23  ;;  %v2722_v21 = vsel %vm2444_vm4, %v3837_v16, 0 }
 0x53b   : > { %v4951_v26 = vpop.eup %4297  ;;  %4303 = vpow2.f32 %v2387_v24 }
 0x53c   : > { %v2399_v25 = vsel %vm1956_vm3, %v4951_v26, 0.0 }
 0x53d   : > { %v4955_v28 = vpop.eup %4299  ;;  %2400 = vadd.xlane.f32.xlu0 %v2399_v25 }
 0x53e   : > { %v2402_v29 = vsel %vm1956_vm3, %v4955_v28, 0.0 }
 0x53f   : > { %2403 = vadd.xlane.f32.xlu1 %v2402_v29 }
 0x543   : > { %v4959_v30 = vpop.eup %4301 }
 0x544   : > { %v2365_v27 = vpop.xlane.xlu0 %2364  ;;  %v2405_v31 = vsel %vm1956_vm3, %v4959_v30, 0.0 }
 0x545   : > { %v4963_v34 = vpop.eup %4303  ;;  %v2375_v35 = vsub.f32 %v2343_v56, %v2365_v27  ;;  %2406 = vadd.xlane.f32.xlu0 %v2405_v31  ;;  %v3833_v56 = vpack.c.bf16 %v1487_v52, %v1487_v52 }
 0x546   : > { %v2368_v38 = vpop.xlane.xlu1 %2367  ;;  %v2408_v39 = vsel %vm1956_vm3, %v4963_v34, 0.0 }
 0x547   : > { %v2389_v40 = vmul.f32 1.442695, %v2375_v35  ;;  %v2376_v41 = vsub.f32 %v2344_v60, %v2368_v38  ;;  %2409 = vadd.xlane.f32.xlu1 %v2408_v39  ;;  %v2538_v48 = vsel %vm2444_vm4, %v3833_v56, 0  ;;  %v2818_v35 = vld [vmem:[%s5299_s25] sm:$0xf] }
 0x548   : > { %v2882_v38 = vsel %vm2444_vm4, %v2818_v35, 0  ;;  %v3772_v39 = vld [vmem:[%s5299_s25 + $0x4] sm:$0xf]  ;;  %v3777_v56 = vld [vmem:[%s5299_s25 + $0x8] sm:$0xf] }
 0x549   : > { %4305 = vpow2.f32 %v2389_v40  ;;  %v2391_v42 = vmul.f32 1.442695, %v2376_v41  ;;  %v2830_v40 = vsel %vm2444_vm4, %v3772_v39, 0 }
 0x54b   : > { %4307 = vpow2.f32 %v2391_v42  ;;  %v3780_v42 = vld [vmem:[%s5299_s25 + $0xc] sm:$0xf] }
 0x54c   : > { %v2992_v51 = vsel %vm2444_vm4, %v3780_v42, 0  ;;  %v4337_v42 = vld [vmem:[%s4720_s12] sm:$0xff] }
 0x553   : > { %v4967_v43 = vpop.eup %4305 }
 0x554   : > { %v2411_v44 = vsel %vm1956_vm3, %v4967_v43, 0.0 }
 0x555   : > { %v4971_v45 = vpop.eup %4307  ;;  %2412 = vadd.xlane.f32.xlu0 %v2411_v44 }
 0x556   : > { %v2414_v47 = vsel %vm1956_vm3, %v4971_v45, 0.0 }
 0x557   : > { %2415 = vadd.xlane.f32.xlu1 %v2414_v47 }
 0x5ba   : > { %v2395_v49 = vpop.xlane.xlu0 %2394 }
 0x5bb   : > { %4309 = vrcp.f32 %v2395_v49 }
 0x5bc   : > { %v2398_v50 = vpop.xlane.xlu1 %2397 }
 0x5bd   : > { %4311 = vrcp.f32 %v2398_v50 }
 0x5c5   : > { %v4310_v55 = vpop.eup %4309 }
 0x5c6   : > { %v2425_v57 = vmul.f32 %v4310_v55, %v4294_v7 }
 0x5c7   : > { %v4312_v58 = vpop.eup %4311 }
 0x5c8   : > { %v2426_v60 = vmul.f32 %v4312_v58, %v4296_v10  ;;  %v2433_v62 = vpack.c.bf16 %v2425_v57, %v2425_v57 }
 0x5ca   : > { %4079 = vmatmul.mubr.msk.bf16.vlgmr.msra.gmra.mrb[44].mxu0 %vm1956_vm3, %v2433_v62  ;;  %v2401_v63 = vpop.xlane.xlu0 %2400  ;;  %v2434_v0 = vpack.c.bf16 %v2426_v60, %v2426_v60 }
 0x5cb   : > { %4089 = vmatpush3.bf16.msra.mxu0 %v2538_v48  ;;  %4313 = vrcp.f32 %v2401_v63  ;;  %4090 = vmatprep.mubr.msk.bf16.mxu0 %vm4440_vm2, %v4439_v46  ;;  %v2936_v63 = vsel %vm2444_vm4, %v3777_v56, 0 }
 0x5cc   : > { %4085 = vmatmul.mubr.msk.bf16.vlgmr.msra.gmra.mrb[36].mxu1 %vm1956_vm3, %v2434_v0  ;;  %v2404_v37 = vpop.xlane.xlu1 %2403  ;;  %4100 = vmatprep.subr.bf16.mxu0 %v4439_v46 }
 0x5cd   : > { %4095 = vmatpush3.bf16.msra.mxu1 %v2584_v32  ;;  %4315 = vrcp.f32 %v2404_v37  ;;  %4096 = vmatprep.mubr.msk.bf16.mxu1 %vm4440_vm2, %v4439_v46 }
 0x5ce   : > { %4106 = vmatprep.subr.bf16.mxu1 %v4439_v46 }
 0x5d2   : > { %v2407_v1 = vpop.xlane.xlu0 %2406 }
 0x5d3   : > { %4317 = vrcp.f32 %v2407_v1 }
 0x5d4   : > { %v2410_v3 = vpop.xlane.xlu1 %2409 }
 0x5d5   : > { %v4314_v4 = vpop.eup %4313  ;;  %4319 = vrcp.f32 %v2410_v3 }
 0x5d6   : > { %v2427_v6 = vmul.f32 %v4314_v4, %v4951_v26  ;;  %v2768_v26 = vsel %vm2444_vm4, %v3838_v19, 0 }
 0x5d7   : > { %v4316_v7 = vpop.eup %4315 }
 0x5d8   : > { %v2428_v10 = vmul.f32 %v4316_v7, %v4955_v28  ;;  %v2435_v12 = vpack.c.bf16 %v2427_v6, %v2427_v6 }
 0x5da   : > { %4091 = vmatmul.mubr.msk.bf16.vlgmr.msra.gmra.mrb[48].mxu0 %vm1956_vm3, %v2435_v12  ;;  %v2436_v14 = vpack.c.bf16 %v2428_v10, %v2428_v10 }
 0x5db   : > { %4101 = vmatpush3.bf16.msra.mxu0 %v2630_v33  ;;  %4102 = vmatprep.mubr.msk.bf16.mxu0 %vm4440_vm2, %v4439_v46 }
 0x5dc   : > { %4097 = vmatmul.mubr.msk.bf16.vlgmr.msra.gmra.mrb[40].mxu1 %vm1956_vm3, %v2436_v14  ;;  %4112 = vmatprep.subr.bf16.mxu0 %v4439_v46 }
 0x5dd   : > { %v4318_v18 = vpop.eup %4317  ;;  %4107 = vmatpush3.bf16.msra.mxu1 %v2676_v17  ;;  %4108 = vmatprep.mubr.msk.bf16.mxu1 %vm4440_vm2, %v4439_v46 }
 0x5de   : > { %v2429_v11 = vmul.f32 %v4318_v18, %v4959_v30  ;;  %4118 = vmatprep.subr.bf16.mxu1 %v4439_v46 }
 0x5df   : > { %v4320_v15 = vpop.eup %4319 }
 0x5e0   : > { %v2430_v22 = vmul.f32 %v4320_v15, %v4963_v34  ;;  %v2437_v20 = vpack.c.bf16 %v2429_v11, %v2429_v11 }
 0x5e2   : > { %4103 = vmatmul.mubr.msk.bf16.vlgmr.msra.gmra.mrb[52].mxu0 %vm1956_vm3, %v2437_v20  ;;  %v2413_v23 = vpop.xlane.xlu0 %2412  ;;  %v2438_v24 = vpack.c.bf16 %v2430_v22, %v2430_v22 }
 0x5e3   : > { %4113 = vmatpush3.bf16.msra.mxu0 %v2722_v21  ;;  %4321 = vrcp.f32 %v2413_v23  ;;  %4114 = vmatprep.mubr.msk.bf16.mxu0 %vm4440_vm2, %v4439_v46 }
 0x5e4   : > { %4109 = vmatmul.mubr.msk.bf16.vlgmr.msra.gmra.mrb[44].mxu1 %vm1956_vm3, %v2438_v24  ;;  %v2416_v25 = vpop.xlane.xlu1 %2415  ;;  %4124 = vmatprep.subr.bf16.mxu0 %v4439_v46 }
 0x5e5   : > { %4119 = vmatpush3.bf16.msra.mxu1 %v2768_v26  ;;  %4323 = vrcp.f32 %v2416_v25  ;;  %4120 = vmatprep.mubr.msk.bf16.mxu1 %vm4440_vm2, %v4439_v46 }
 0x5e6   : > { %4130 = vmatprep.subr.bf16.mxu1 %v4439_v46 }
 0x5ed   : > { %v4322_v28 = vpop.eup %4321 }
 0x5ee   : > { %v2431_v29 = vmul.f32 %v4322_v28, %v4967_v43 }
 0x5ef   : > { %v4324_v30 = vpop.eup %4323 }
 0x5f0   : > { %v2432_v27 = vmul.f32 %v4324_v30, %v4971_v45  ;;  %v2439_v31 = vpack.c.bf16 %v2431_v29, %v2431_v29 }
 0x5f2   : > { %4115 = vmatmul.mubr.msk.bf16.vlgmr.msra.gmra.mrb[56].mxu0 %vm1956_vm3, %v2439_v31  ;;  %v2440_v34 = vpack.c.bf16 %v2432_v27, %v2432_v27  ;;  %v3783_v31 = vld [vmem:[%s5300_s10] ss:$0 sm:$0xff] }
 0x5f3   : > { %4126 = vmatprep.mubr.msk.bf16.mxu0 %vm4440_vm2, %v4439_v46  ;;  %4125 = vmatpush3.bf16.msra.mxu0 %v2830_v40 }
 0x5f4   : > { %4121 = vmatmul.mubr.msk.bf16.vlgmr.msra.gmra.mrb[48].mxu1 %vm1956_vm3, %v2440_v34  ;;  %4136 = vmatprep.subr.bf16.mxu0 %v4439_v46 }
 0x5f5   : > { %4132 = vmatprep.mubr.msk.bf16.mxu1 %vm4440_vm2, %v4439_v46  ;;  %4131 = vmatpush3.bf16.msra.mxu1 %v2882_v38 }
 0x5f6   : > { %4142 = vmatprep.subr.bf16.mxu1 %v4439_v46 }
 0x69d   : > { %v2482_v41 = vpop.f32.mrb[44].mxu0 }
 0x69e   : > { %v4080_v43 = vpop.f32.mrb[45].mxu0 }
 0x69f   : > { %v2485_v44 = vpop.f32.mrb[46].mxu0  ;;  %v2528_v45 = vpop.f32.mrb[36].mxu1 }
 0x6a0   : > { %v3840_v47 = vpack.c.bf16 %v2528_v45, %v2482_v41  ;;  %v4081_v49 = vpop.f32.mrb[47].mxu0  ;;  %v4086_v50 = vpop.f32.mrb[37].mxu1  ;;  %v4338_v45 = vld [vmem:[%s4720_s12 + $0x8] sm:$0xff] }
 0x6a1   : > { %v2531_v52 = vpop.f32.mrb[38].mxu1 }
 0x6a2   : > { %v4087_v54 = vpop.f32.mrb[39].mxu1  ;;  %4133 = vmatmul.mubr.msk.bf16.vlgmr.msra.gmra.mrb[52].mxu1 %vm1956_vm3, %v3840_v47 }
 0x6a3   : > { %4143 = vmatpush3.bf16.msra.mxu1 %v2992_v51  ;;  %4144 = vmatprep.mubr.msk.bf16.mxu1 %vm4440_vm2, %v4439_v46 }
 0x6a4   : > { %4156 = vmatprep.subr.bf16.mxu1 %v4439_v46 }
 0x6ad   : > { %v2574_v55 = vpop.f32.mrb[48].mxu0 }
 0x6ae   : > { %v4092_v57 = vpop.f32.mrb[49].mxu0 }
 0x6af   : > { %v2577_v58 = vpop.f32.mrb[50].mxu0  ;;  %v2620_v59 = vpop.f32.mrb[40].mxu1 }
 0x6b0   : > { %v3839_v60 = vpack.c.bf16 %v2620_v59, %v2574_v55  ;;  %v4093_v62 = vpop.f32.mrb[51].mxu0  ;;  %v4098_v48 = vpop.f32.mrb[41].mxu1 }
 0x6b1   : > { %v2623_v0 = vpop.f32.mrb[42].mxu1  ;;  %v4279_v48 = vld [vmem:[%s4705_s29] sm:$0xff]  }
 0x6b2   : > { %v4099_v32 = vpop.f32.mrb[43].mxu1  ;;  %4127 = vmatmul.mubr.msk.bf16.vlgmr.msra.gmra.mrb[60].mxu0 %vm1956_vm3, %v3839_v60 }
 0x6b3   : > { %4137 = vmatpush3.bf16.msra.mxu0 %v2936_v63  ;;  %4138 = vmatprep.mubr.msk.bf16.mxu0 %vm4440_vm2, %v4439_v46  ;;  %v4280_v63 = vld [vmem:[%s4705_s29 + $0x8] sm:$0xff]  }
 0x6b4   : > { %4148 = vmatprep.subr.bf16.mxu0 %v4439_v46 }
 0x6b5   : > { %v2666_v37 = vpop.f32.mrb[52].mxu0 }
 0x6b6   : > { %v4104_v53 = vpop.f32.mrb[53].mxu0 }
 0x6b7   : > { %v2669_v61 = vpop.f32.mrb[54].mxu0  ;;  %v2712_v1 = vpop.f32.mrb[44].mxu1 }
 0x6b8   : > { %v3841_v2 = vpack.c.bf16 %v2712_v1, %v2666_v37  ;;  %v4105_v3 = vpop.f32.mrb[55].mxu0  ;;  %v4110_v4 = vpop.f32.mrb[45].mxu1 }
 0x6b9   : > { %v2715_v5 = vpop.f32.mrb[46].mxu1  ;;  %v3784_v3 = vld [vmem:[%s5302_s14] ss:$0 sm:$0xff] }
 0x6ba   : > { %v4111_v6 = vpop.f32.mrb[47].mxu1  ;;  %4139 = vmatmul.mubr.msk.bf16.vlgmr.msra.gmra.mrb[64].mxu0 %vm1956_vm3, %v3841_v2 }
 0x6bb   : > { %4152 = vmatprep.mubr.msk.bf16.mxu0 %vm4440_vm2, %v4439_v46  ;;  %4149 = vmatpush3.bf16.msra.mxu0 %v4279_v48 }
 0x6bc   : > { %4150 = vmatprep.subr.bf16.mxu0 %v4439_v46 }
 0x6bf   : > { %4151 = vmatpush3.bf16.msra.mxu0 %v4280_v63 }
 0x6c5   : > { %v2758_v7 = vpop.f32.mrb[56].mxu0 }
 0x6c6   : > { %v4116_v8 = vpop.f32.mrb[57].mxu0 }
 0x6c7   : > { %v2761_v9 = vpop.f32.mrb[58].mxu0  ;;  %v2804_v10 = vpop.f32.mrb[48].mxu1  ;;  %v3785_v8 = vld [vmem:[%s967_s19] ss:$0 sm:$0xff] }
 0x6c8   : > { %v3842_v12 = vpack.c.bf16 %v2804_v10, %v2758_v7  ;;  %v4117_v13 = vpop.f32.mrb[59].mxu0  ;;  %v4122_v33 = vpop.f32.mrb[49].mxu1 }
 0x6c9   : > { %v2807_v14 = vpop.f32.mrb[50].mxu1  ;;  %v4281_v33 = vld [vmem:[%s4714_s21] sm:$0xff]  }
 0x6ca   : > { %v4123_v36 = vpop.f32.mrb[51].mxu1  ;;  %4145 = vmatmul.mubr.msk.bf16.vlgmr.msra.gmra.mrb[56].mxu1 %vm1956_vm3, %v3842_v12  ;;  %v4282_v14 = vld [vmem:[%s4714_s21 + $0x8] sm:$0xff]  }
 0x6cb   : > { %4172 = vmatprep.mubr.msk.bf16.mxu1 %vm4440_vm2, %v4439_v46  ;;  %4157 = vmatpush3.bf16.msra.mxu1 %v4281_v33  ;;  %v4283_v36 = vld [vmem:[%s4714_s21 + $0x10] sm:$0xff]  }
 0x6cc   : > { %4158 = vmatprep.subr.bf16.mxu1 %v4439_v46 }
 0x6cf   : > { %4159 = vmatpush3.bf16.msra.mxu1 %v4282_v14 }
 0x6d0   : > { %4160 = vmatprep.subr.bf16.mxu1 %v4439_v46 }
 0x6d3   : > { %4161 = vmatpush3.bf16.msra.mxu1 %v4283_v36 }
 0x6d4   : > { %4162 = vmatprep.subr.bf16.mxu1 %v4439_v46 }
 0x775   : > { %v2918_v17 = vpop.f32.mrb[52].mxu1 }
 0x776   : > { %v4134_v18 = vpop.f32.mrb[53].mxu1 }
 0x777   : > { %v2921_v16 = vpop.f32.mrb[54].mxu1  ;;  %v4285_v18 = vld [vmem:[%s4714_s21 + $0x20] sm:$0xff]  }
 0x778   : > { %v4135_v11 = vpop.f32.mrb[55].mxu1 }
 0x779   : > { %v4287_v11 = vld [vmem:[%s4714_s21 + $0x30] sm:$0xff]  }
 0x785   : > { %v2866_v15 = vpop.f32.mrb[60].mxu0 }
 0x786   : > { %v2919_v19 = vadd.f32 %v2918_v17, %v2866_v15  ;;  %v4128_v22 = vpop.f32.mrb[61].mxu0  ;;  %v4284_v17 = vld [vmem:[%s4714_s21 + $0x18] sm:$0xff]  }
 0x787   : > { %v2869_v20 = vpop.f32.mrb[62].mxu0  ;;  %4163 = vmatpush3.bf16.msra.mxu1 %v4284_v17  ;;  %v4288_v15 = vld [vmem:[%s4714_s21 + $0x38] sm:$0xff]  }
 0x788   : > { %v2922_v21 = vadd.f32 %v2921_v16, %v2869_v20  ;;  %v4129_v23 = vpop.f32.mrb[63].mxu0  ;;  %4164 = vmatprep.subr.bf16.mxu1 %v4439_v46  ;;  %v4286_v16 = vld [vmem:[%s4714_s21 + $0x28] sm:$0xff]  }
 0x78b   : > { %4165 = vmatpush3.bf16.msra.mxu1 %v4285_v18 }
 0x78c   : > { %4166 = vmatprep.subr.bf16.mxu1 %v4439_v46 }
 0x78d   : > { %v2972_v24 = vpop.f32.mrb[64].mxu0 }
 0x78e   : > { %v2979_v26 = vadd.f32 %v2972_v24, %v2919_v19  ;;  %v4140_v25 = vpop.f32.mrb[65].mxu0  ;;  %v3786_v19 = vld [vmem:[%s975_s4] ss:$0 sm:$0xff] }
 0x78f   : > { %v2975_v28 = vpop.f32.mrb[66].mxu0  ;;  %4167 = vmatpush3.bf16.msra.mxu1 %v4286_v16 }
 0x790   : > { %v2980_v29 = vadd.f32 %v2975_v28, %v2922_v21  ;;  %v4141_v30 = vpop.f32.mrb[67].mxu0  ;;  %4168 = vmatprep.subr.bf16.mxu1 %v4439_v46 }
 0x793   : > { %4169 = vmatpush3.bf16.msra.mxu1 %v4287_v11 }
 0x794   : > { %4170 = vmatprep.subr.bf16.mxu1 %v4439_v46 }
 0x797   : > { %4171 = vmatpush3.bf16.msra.mxu1 %v4288_v15 }
 0x79d   : > { %v3028_v27 = vpop.f32.mrb[56].mxu1 }
 0x79e   : > { %v3035_v34 = vadd.f32 %v3028_v27, %v2979_v26  ;;  %v4146_v35 = vpop.f32.mrb[57].mxu1 }
 0x79f   : > { %v3031_v38 = vpop.f32.mrb[58].mxu1 }
 0x7a0   : > { %v3044_v39 = vadd.f32 %v3783_v31, %v3035_v34  ;;  %v3036_v40 = vadd.f32 %v3031_v38, %v2980_v29  ;;  %v4147_v41 = vpop.f32.mrb[59].mxu1 }
 0x7a2   : > { %v5056_v43 = vadd.f32 %v4337_v42, %v3044_v39  ;;  %v3045_v44 = vadd.f32 %v3783_v31, %v3036_v40  ;;  %v3792_v42 = vld [vmem:[%s983_s16] ss:$0 sm:$0xff] }
 0x7a4   : > { %v5059_v47 = vadd.f32 %v4338_v45, %v3045_v44  ;;  %v3050_v49 = vsel %vm1050_vm1, %v5056_v43, 0.0 }
 0x7a5   : > { %3051 = vadd.xlane.f32.xlu0 %v3050_v49 }
 0x7a6   : > { %v3053_v50 = vsel %vm1050_vm1, %v5059_v47, 0.0 }
 0x7a7   : > { %3054 = vadd.xlane.f32.xlu1 %v3053_v50 }
 0x832   : > { %v3052_v51 = vpop.xlane.xlu0 %3051 }
 0x833   : > { %v3056_v52 = vmul.f32 0.03125, %v3052_v51 }
 0x834   : > { %v3055_v54 = vpop.xlane.xlu1 %3054 }
 0x835   : > { %v3058_v55 = vsub.f32 %v5056_v43, %v3056_v52  ;;  %v3057_v56 = vmul.f32 0.03125, %v3055_v54 }
 0x837   : > { %v3059_v57 = vsub.f32 %v5059_v47, %v3057_v56  ;;  %v3060_v58 = vmul.f32 %v3058_v55, %v3058_v55 }
 0x839   : > { %v3062_v59 = vsel %vm1050_vm1, %v3060_v58, 0.0  ;;  %v3061_v60 = vmul.f32 %v3059_v57, %v3059_v57 }
 0x83a   : > { %3063 = vadd.xlane.f32.xlu0 %v3062_v59 }
 0x83b   : > { %v3065_v62 = vsel %vm1050_vm1, %v3061_v60, 0.0 }
 0x83c   : > { %3066 = vadd.xlane.f32.xlu1 %v3065_v62 }
 0x8c7   : > { %v3064_v0 = vpop.xlane.xlu0 %3063 }
 0x8c8   : > { %v3068_v32 = vmul.f32 0.03125, %v3064_v0 }
 0x8c9   : > { %v3067_v37 = vpop.xlane.xlu1 %3066 }
 0x8ca   : > { %v3070_v53 = vadd.f32 1e-05, %v3068_v32  ;;  %v3069_v61 = vmul.f32 0.03125, %v3067_v37 }
 0x8cc   : > { %4325 = vrsqrt.f32 %v3070_v53  ;;  %v3071_v1 = vadd.f32 1e-05, %v3069_v61 }
 0x8ce   : > { %4327 = vrsqrt.f32 %v3071_v1 }
 0x8d6   : > { %v4326_v2 = vpop.eup %4325 }
 0x8d7   : > { %v3074_v4 = vmul.f32 %v4326_v2, %v3058_v55 }
 0x8d8   : > { %v4328_v5 = vpop.eup %4327 }
 0x8d9   : > { %v3082_v6 = vmul.f32 %v3784_v3, %v3074_v4  ;;  %v3075_v7 = vmul.f32 %v4328_v5, %v3059_v57  ;;  %v3802_v5 = vld [vmem:[%s5307_s5] ss:$0 sm:$0xff] (!%p3801_p1) }
 0x8db   : > { %v3083_v9 = vmul.f32 %v3784_v3, %v3075_v7  ;;  %v3090_v10 = vadd.f32 %v3785_v8, %v3082_v6  ;;  %v3803_v7 = vld [vmem:[%s5308_s8] ss:$0 sm:$0xff] (!%p3801_p1) }
 0x8dd   : > { %v3091_v12 = vadd.f32 %v3785_v8, %v3083_v9 }
 0x8df   : > { %v3092_v13 = vpack.c.bf16 %v3091_v12, %v3090_v10 }
 0x8e1   : > { %4153 = vmatmul.mubr.msk.bf16.vlgmr.msra.gmra.mrb[68].mxu0 %vm1050_vm1, %v3092_v13 }
 0x9b4   : > { %v3153_v22 = vpop.f32.mrb[68].mxu0 }
 0x9b5   : > { %v3154_v20 = vadd.f32 %v3786_v19, %v3153_v22  ;;  %v4154_v21 = vpop.f32.mrb[69].mxu0 }
 0x9b6   : > { %v3156_v23 = vpop.f32.mrb[70].mxu0 }
 0x9b7   : > { %v3790_v24 = vmul.f32 -1.702, %v3154_v20  ;;  %v3157_v26 = vadd.f32 %v3786_v19, %v3156_v23  ;;  %v4155_v25 = vpop.f32.mrb[71].mxu0 }
 0x9b9   : > { %v3164_v28 = vmul.f32 1.442695, %v3790_v24  ;;  %v3791_v29 = vmul.f32 -1.702, %v3157_v26 }
 0x9bb   : > { %4329 = vpow2.f32 %v3164_v28  ;;  %v3166_v30 = vmul.f32 1.442695, %v3791_v29 }
 0x9bd   : > { %4331 = vpow2.f32 %v3166_v30 }
 0x9c5   : > { %v4330_v46 = vpop.eup %4329 }
 0x9c6   : > { %v3168_v27 = vadd.f32 1.0, %v4330_v46 }
 0x9c7   : > { %v4332_v31 = vpop.eup %4331 }
 0x9c8   : > { %4333 = vrcp.f32 %v3168_v27  ;;  %v3169_v34 = vadd.f32 1.0, %v4332_v31 }
 0x9ca   : > { %4335 = vrcp.f32 %v3169_v34 }
 0x9d2   : > { %v4334_v35 = vpop.eup %4333 }
 0x9d3   : > { %v3174_v39 = vmul.f32 %v4334_v35, %v3154_v20 }
 0x9d4   : > { %v4336_v38 = vpop.eup %4335 }
 0x9d5   : > { %v3175_v40 = vmul.f32 %v4336_v38, %v3157_v26 }
 0x9d7   : > { %v3176_v41 = vpack.c.bf16 %v3175_v40, %v3174_v39 }
 0x9d9   : > { %4173 = vmatmul.mubr.bf16.vlgmr.msra.gmra.mrb[60].mxu1 %v3176_v41 }
 0xaac   : > { %v3282_v44 = vpop.f32.mrb[60].mxu1 }
 0xaad   : > { %v3283_v45 = vadd.f32 %v3792_v42, %v3282_v44  ;;  %v4174_v49 = vpop.f32.mrb[61].mxu1  ;;  %3296 = sbr.rel (%p3801_p1) target bundleno = 3055 (0xbef), region = 116 }
 0xaae   : > { %v3285_v50 = vpop.f32.mrb[62].mxu1 }
 0xaaf   : > { %v3289_v51 = vadd.f32 %v3283_v45, %v5056_v43  ;;  %v3286_v52 = vadd.f32 %v3792_v42, %v3285_v50  ;;  %v4175_v54 = vpop.f32.mrb[63].mxu1 }
 0xab1   : > { %3291 = vst.msk [vmem:[%s4720_s12] sm:$0xff] %vm1050_vm1, %v3289_v51  ;;  %v3290_v55 = vadd.f32 %v3286_v52, %v5059_v47  ;;  %v3299_v56 = vsel (!%p3801_p1), %vm1050_vm1, %v3289_v51, 0.0 }
 0xab2   : > { %3300 = vadd.xlane.f32.xlu0 (!%p3801_p1), %v3299_v56 }
 0xab3   : > { %3292 = vst.msk [vmem:[%s4720_s12 + $0x8] sm:$0xff] %vm1050_vm1, %v3290_v55  ;;  %v3302_v57 = vsel (!%p3801_p1), %vm1050_vm1, %v3290_v55, 0.0 }
 0xab6   : > { %3303 = vadd.xlane.f32.xlu0 %v3302_v57 }
 0xb3f   : > { %v3301_v58 = vpop.xlane.xlu0 %3300 }
 0xb40   : > { %v3305_v59 = vmul.f32 0.03125, %v3301_v58 }
 0xb42   : > { %v3307_v43 = vsub.f32 %v3289_v51, %v3305_v59 }
 0xb43   : > { %v3304_v60 = vpop.xlane.xlu0 %3303 }
 0xb44   : > { %v3306_v62 = vmul.f32 0.03125, %v3304_v60  ;;  %v3309_v48 = vmul.f32 %v3307_v43, %v3307_v43 }
 0xb46   : > { %v3308_v63 = vsub.f32 %v3290_v55, %v3306_v62  ;;  %v3311_v47 = vsel %vm1050_vm1, %v3309_v48, 0.0 }
 0xb47   : > { %3312 = vadd.xlane.f32.xlu1 %v3311_v47 }
 0xb48   : > { %v3310_v0 = vmul.f32 %v3308_v63, %v3308_v63 }
 0xb4a   : > { %v3314_v32 = vsel %vm1050_vm1, %v3310_v0, 0.0 }
 0xb4b   : > { %3315 = vadd.xlane.f32.xlu1 %v3314_v32 }
 0xbd4   : > { %v3313_v37 = vpop.xlane.xlu1 %3312 }
 0xbd5   : > { %v3317_v53 = vmul.f32 0.03125, %v3313_v37 }
 0xbd7   : > { %v3319_v61 = vadd.f32 1e-05, %v3317_v53 }
 0xbd8   : > { %v3316_v1 = vpop.xlane.xlu1 %3315 }
 0xbd9   : > { %4339 = vrsqrt.f32 %v3319_v61  ;;  %v3318_v2 = vmul.f32 0.03125, %v3316_v1 }
 0xbdb   : > { %v3320_v3 = vadd.f32 1e-05, %v3318_v2 }
 0xbdd   : > { %4341 = vrsqrt.f32 %v3320_v3 }
 0xbe3   : > { %v4340_v4 = vpop.eup %4339 }
 0xbe4   : > { %v3323_v6 = vmul.f32 %v4340_v4, %v3307_v43 }
 0xbe6   : > { %v3331_v8 = vmul.f32 %v3802_v5, %v3323_v6 }
 0xbe7   : > { %v4342_v9 = vpop.eup %4341 }
 0xbe8   : > { %v3339_v10 = vadd.f32 %v3803_v7, %v3331_v8  ;;  %v3324_v12 = vmul.f32 %v4342_v9, %v3308_v63 }
 0xbea   : > { %3341 = vst.msk [vmem:[%s4720_s12] sm:$0xff] %vm1050_vm1, %v3339_v10  ;;  %v3332_v13 = vmul.f32 %v3802_v5, %v3324_v12 }
 0xbec   : > { %v3340_v33 = vadd.f32 %v3803_v7, %v3332_v13 }
 0xbee   : > { %3342 = vst.msk [vmem:[%s4720_s12 + $0x8] sm:$0xff] %vm1050_vm1, %v3340_v33 }
 0xbef PF: > { %s5309_s28 = sld [smem:[#allocation9_spill]]  ;;  %s5310_s0 = sld [smem:[#allocation6_spill]] }
 0xbf0   : > { %s5312_s20 = sld [smem:[#allocation42_spill]]  ;;  %s3357_s11 = sshll.u32 %s4720_s12, 4  ;;  %s5136_s11 = int_to_ptr.vmem [resolvable:$true] %s3357_s11 }
 0xbf1   : > { %s4343_s14 = scalar_lea.vmem %s5136_s11, 256  ;;  %s4441_s29 = smov [#allocation2]  }
 0xbf2   : > { %p4344_p2 = scmp.ne.s32.totalorder %s5136_s11, %s4343_s14  ;;  %s4347_s18 = sshll.u32 %s4441_s29, 4  ;;  %s4348_s18 = int_to_ptr.vmem [resolvable:$false] %s4347_s18 }
 0xbf3   : > { %s4349_s22 = scalar_lea.vmem %s4348_s18, 512  ;;  %p4350_p6 = scmp.lt.s32.totalorder %s5136_s11, %s4348_s18 }
 0xbf4   : > { %p4345_p4 = pnand %p4344_p2, %p4608_p3  ;;  %p4351_p7 = scmp.lt.s32.totalorder %s4349_s22, %s4343_s14 }
 0xbf5   : > { %s3843_s27 = sshll.u32 %s5309_s28, 8  ;;  %s5313_s6 = sand.u32 1, %s5310_s0  }
 0xbf6   : > { %s5133_s10 = scalar_lea.hbm %s5312_s20, %s3843_s27  ;;  %s5140_s13 = scalar_lea.sflag [#allocation3], %s5313_s6 }
 0xbf7   : > { %p4346_p5 = pneg %p4345_p4  ;;  %p4352_p8 = por %p4351_p7, %p4350_p6 }
 0xbf9   : > { %p4353_p10 = pnand %p4352_p8, %p4346_p5 }
 0xbfb   : > { %4356 = shalt.err (!%p4353_p10)
}
 0xbfc   : > { %s4357_s12 = scalar_lea.hbm %s5133_s10, 256  ;;  %s4361_s1 = scalar_lea.hbm %s5312_s20, 512 }
 0xbfd   : > { %p4358_p11 = scmp.ne.s32.totalorder %s5133_s10, %s4357_s12  ;;  %p4362_p0 = scmp.lt.u32.totalorder %s5133_s10, %s5312_s20 }
 0xbfe   : > { %p4363_p1 = scmp.lt.u32.totalorder %s4361_s1, %s4357_s12  ;;  %p4365_p4 = scmp.lt.u32.totalorder %s4357_s12, %s5133_s10 }
 0xbff   : > { %p4359_p12 = pnand %p4358_p11, %p4608_p3 }
 0xc00   : > { %p4364_p2 = por %p4363_p1, %p4362_p0 }
 0xc01   : > { %p4360_p13 = pneg %p4359_p12 }
 0xc02   : > { %p4366_p5 = por %p4365_p4, %p4364_p2 }
 0xc04   : > { %p4367_p6 = pnand %p4366_p5, %p4360_p13 }
 0xc06   : > { %4370 = shalt.err (!%p4367_p6)
}
 0xc07   : > { %s4442_s24 = smov 128   ;;  %s4443_s17 = smov 8  }
 0xc08   : > { %4176 = dma.vmem_to_hbm [thread:$0]  (%p4608_p3), %s5136_s11, 256, %s5133_s10, %s5140_s13, %s4442_s24, %s4442_s24, %s4443_s17  }
 0xc09 PF: > { %s5314_s16 = sld [smem:[#allocation12_spill]]  ;;  %s5315_s2 = sld [smem:[#allocation5_spill]] }
 0xc0f   : > { %p4182_p7 = scmp.ge.s32.totalorder %s5314_s16, 2  ;;  %s3372_s30 = sand.u32 1, %s5315_s2  }
 0xc10   : > { %s3373_s23 = scalar_lea.sflag [#allocation3], %s3372_s30 }
 0xc11   : > { %p4179_p8 = pnand %p4182_p7, %p4618_p9 }
 0xc13   : > { %4404 = dma.done.wait (!%p4179_p8), %s3373_s23, 256  }
 0xc14   : > { %4406 = vsyncadd (!%p4179_p8), %s3373_s23, 4294967040  ;;  %s35_s1 = sadd.s32 1, %s5314_s16   ;;  %s5317_s3 = sld [smem:[#allocation6_spill]] }
 0xc15   : > { %p32_p10 = scmp.ge.s32.totalorder %s35_s1, 6   ;;  %s5318_s28 = sld [smem:[#allocation7_spill]] }
 0xc16   : > { %s5319_s29 = sld [smem:[#allocation17_spill]]  ;;  %s5320_s30 = sld [smem:[#allocation10_spill]] }
 0xc17   : > { %s5321_s4 = sld [smem:[#allocation11_spill]]  ;;  %s5322_s0 = sld [smem:[#allocation13_spill]] }
 0xc18   : > { %s5323_s23 = sld [smem:[#allocation15_spill]]  ;;  %34 = sbr.rel (!%p32_p10) target bundleno = 27 (0x1b), region = 223 }
 0xc1f   :  { %3378 = vsyncpa [#allocation3], 1 }
 0xc20   :  { %3380 = vsyncpa [#allocation3 + $0x1], 1 }

</bundles_post_ra>
